<compile_context>
chip_gen: v7x
topology: tpu7x:2x2x1
jax: 0.10.0
libtpu: 0.0.40
codegen_flags: <defaults>
</compile_context>

<pallas_src>
import functools

import jax
import jax.numpy as jnp
from jax.experimental import pallas as pl
from jax.experimental.pallas import tpu as pltpu

LATENT_DIM = 8     # VAE.latent_dim (logical)
LATENT_PAD = 128   # latent dim zero-padded to a full lane width for the MXU
HIDDEN_PAD = 128   # hidden dim zero-padded to a full lane width for the MXU

_VMEM_LIMIT = 32 << 20    # explicit scoped-VMEM limit (safe on v5e/v6e/v7x)
_VMEM_BUDGET = 28 << 20   # headroom under the limit used for tile sizing


def _vae_kernel(x_ref, we1_ref, be1_ref, we2_ref, be2_ref,
                wd1_ref, bd1_ref, wd2_ref, bd2_ref, eps_ref,
                out_ref, mu_ref, z_scratch):
    """Fused VAE forward for one (TB, D) batch tile.

    Weights are bf16 (MXU), accumulation + elementwise/transcendental math is
    f32. eps and mu move at their logical 8-lane width; the 128-lane padded z
    for the decoder matmul is assembled in VMEM scratch.
    """
    bf16 = jnp.bfloat16

    x = x_ref[...].astype(bf16)          # no-op when x arrives as bf16

    # ---- encoder: Linear -> ReLU -> Linear ----
    h1 = jnp.dot(x, we1_ref[...], preferred_element_type=jnp.float32) + be1_ref[...]
    h1 = jnp.maximum(h1, 0.0)
    h_enc = jnp.dot(h1.astype(bf16), we2_ref[...],
                    preferred_element_type=jnp.float32) + be2_ref[...]

    # ---- reparameterization (logical 8 latent lanes): mu = h_enc, sigma = exp(h_enc) ----
    mu = h_enc[:, :LATENT_DIM]                      # (tb, 8) f32
    sigma = jnp.exp(mu)
    z_head = mu + sigma * eps_ref[...]              # eps at logical (tb, 8)

    # Lane-dense (tb, 128) z for the decoder matmul: padded latent lanes carry
    # h_enc (== 0 with zero-padded we2/be2) and hit zero rows of wd1, so they
    # never contribute to the output.
    z_scratch[...] = h_enc
    z_scratch[:, :LATENT_DIM] = z_head
    z = z_scratch[...].astype(bf16)

    # ---- decoder: Linear -> ReLU -> Linear ----
    h2 = jnp.dot(z, wd1_ref[...], preferred_element_type=jnp.float32) + bd1_ref[...]
    h2 = jnp.maximum(h2, 0.0)
    out = jnp.dot(h2.astype(bf16), wd2_ref[...],
                  preferred_element_type=jnp.float32) + bd2_ref[...]

    out_ref[...] = out.astype(out_ref.dtype)
    mu_ref[...] = mu.astype(mu_ref.dtype)           # z_sigma = exp(z_mean) in wrapper


def _pick_block_b(B, D, x_itemsize, out_itemsize, resident_bytes):
    """Adaptive batch tile: whole batch if it fits, else <=1024 rows (mult. of 8)."""
    # Streamed bytes per batch row (double-buffered by the pipeline) plus the
    # single-buffered z scratch row.
    per_row = (2 * (x_itemsize * D               # x tile
                    + out_itemsize * D           # decoder-output tile
                    + 4 * LATENT_DIM             # eps tile
                    + 4 * LATENT_DIM)            # mu tile
               + 4 * LATENT_PAD)                 # z scratch
    avail = max(_VMEM_BUDGET - 2 * resident_bytes, per_row)
    tb = min(B, 1024, avail // per_row)
    if tb >= B:
        return B                                 # single step: no pipeline machinery
    return max(8, (tb // 8) * 8)


@functools.partial(jax.jit, static_argnames=("block_b", "out_dtype"))
def vae_forward(x, params, eps, *, block_b=None, out_dtype=jnp.float32):
    """Fused VAE forward. Returns (out, z_mean, z_sigma).

    `params` must be the padded/bf16 params produced by `pad_params`.
    `eps` has the logical shape (B, LATENT_DIM).
    On v7x with large B, pass block_b explicitly so grid >= 4 (>= 2 steps per
    TensorCore) to keep per-core pipelining alongside core sharding.
    """
    B, D = x.shape
    HP = params["we1"].shape[1]
    LP = params["we2"].shape[1]
    L = LATENT_DIM
    assert eps.shape == (B, L)

    resident_bytes = sum(int(params[k].size) * params[k].dtype.itemsize
                         for k in params)
    out_itemsize = jnp.dtype(out_dtype).itemsize
    tb = block_b if block_b is not None else _pick_block_b(
        B, D, x.dtype.itemsize, out_itemsize, resident_bytes)
    tb = min(tb, B)
    grid = (pl.cdiv(B, tb),)

    def batch_spec(cols):
        return pl.BlockSpec((tb, cols), lambda i: (i, 0))

    def resident(arr):
        # Same block index every grid step -> stays VMEM-resident, no re-DMA.
        return pl.BlockSpec(arr.shape, lambda i: (0, 0))

    args = (x,
            params["we1"], params["be1"], params["we2"], params["be2"],
            params["wd1"], params["bd1"], params["wd2"], params["bd2"],
            eps)
    in_specs = [
        batch_spec(D),
        resident(params["we1"]), resident(params["be1"]),
        resident(params["we2"]), resident(params["be2"]),
        resident(params["wd1"]), resident(params["bd1"]),
        resident(params["wd2"]), resident(params["bd2"]),
        batch_spec(L),                              # eps at logical width
    ]

    cost = pl.CostEstimate(
        flops=2 * B * (D * HP + HP * LP + LP * HP + HP * D),
        transcendentals=B * L,
        bytes_accessed=(resident_bytes
                        + B * D * x.dtype.itemsize      # x read
                        + B * L * eps.dtype.itemsize    # eps read
                        + B * D * out_itemsize          # out write
                        + B * L * 4),                   # z_mean write
    )

    out, z_mean = pl.pallas_call(
        _vae_kernel,
        out_shape=(
            jax.ShapeDtypeStruct((B, D), out_dtype),     # decoder output
            jax.ShapeDtypeStruct((B, L), jnp.float32),   # z_mean (logical width)
        ),
        grid=grid,
        in_specs=in_specs,
        out_specs=(batch_spec(D), batch_spec(L)),
        scratch_shapes=[pltpu.VMEM((tb, LATENT_PAD), jnp.float32)],
        compiler_params=pltpu.CompilerParams(
            dimension_semantics=("parallel",),
            vmem_limit_bytes=_VMEM_LIMIT),
        cost_estimate=cost,
    )(*args)

    z_sigma = jnp.exp(z_mean)    # tiny wrapper-side exp keeps kernel outputs minimal
    return out, z_mean, z_sigma


def init_params(key, input_dim, hidden_dim, latent_dim):
    """Deterministic parameter init (PyTorch-Linear-style uniform fan-in)."""
    ks = jax.random.split(key, 8)

    def linear(kw, kb, fan_in, fan_out):
        bound = 1.0 / jnp.sqrt(jnp.float32(fan_in))
        w = jax.random.uniform(kw, (fan_in, fan_out), jnp.float32, -bound, bound)
        b = jax.random.uniform(kb, (1, fan_out), jnp.float32, -bound, bound)
        return w, b

    we1, be1 = linear(ks[0], ks[1], input_dim, hidden_dim)
    we2, be2 = linear(ks[2], ks[3], hidden_dim, latent_dim)
    wd1, bd1 = linear(ks[4], ks[5], latent_dim, hidden_dim)
    wd2, bd2 = linear(ks[6], ks[7], hidden_dim, input_dim)
    return dict(we1=we1, be1=be1, we2=we2, be2=be2,
                wd1=wd1, bd1=bd1, wd2=wd2, bd2=bd2)


def pad_params(p, *, hidden_pad=HIDDEN_PAD, latent_pad=LATENT_PAD,
               weight_dtype=jnp.bfloat16):
    """Zero-pad hidden/latent dims to 128 lanes; cast weights to bf16.

    Zero padding of we2's extra columns, be2's extra entries and wd1's extra
    rows is what makes the in-kernel lane padding exact.
    """
    def pad(a, rows, cols):
        out = jnp.zeros((rows, cols), jnp.float32)
        return out.at[:a.shape[0], :a.shape[1]].set(a)

    D = p["we1"].shape[0]
    return dict(
        we1=pad(p["we1"], D, hidden_pad).astype(weight_dtype),
        be1=pad(p["be1"], 1, hidden_pad),
        we2=pad(p["we2"], hidden_pad, latent_pad).astype(weight_dtype),
        be2=pad(p["be2"], 1, latent_pad),
        wd1=pad(p["wd1"], latent_pad, hidden_pad).astype(weight_dtype),
        bd1=pad(p["bd1"], 1, hidden_pad),
        wd2=pad(p["wd2"], hidden_pad, D).astype(weight_dtype),
        bd2=p["bd2"],
    )


if __name__ == "__main__":
    B, D, H, L = 256, 128, 32, LATENT_DIM

    key = jax.random.PRNGKey(0)
    k_x, k_eps, k_p = jax.random.split(key, 3)

    # bf16 activations at the pallas_call boundary (the kernel feeds the MXU in
    # bf16 anyway) halve the dominant HBM read.
    x = jax.random.normal(k_x, (B, D), dtype=jnp.float32).astype(jnp.bfloat16)
    # eps plays the role of np.random.normal(0, 1, size=sigma.size()) — drawn
    # deterministically with a fixed key, at its logical (B, 8) shape.
    eps = jax.random.normal(k_eps, (B, L), dtype=jnp.float32)

    params = pad_params(init_params(k_p, D, H, L))

    out, z_mean, z_sigma = vae_forward(x, params, eps)
    jax.block_until_ready((out, z_mean, z_sigma))

    # Pure-JAX reference with the same bf16-matmul / f32-accumulate recipe on
    # the same padded parameters (padding is exact, so this equals the
    # unpadded logical forward).
    bf16 = jnp.bfloat16
    f32 = jnp.float32
    h1 = jnp.maximum(
        jnp.dot(x.astype(bf16), params["we1"], preferred_element_type=f32)
        + params["be1"], 0.0)
    h_enc = (jnp.dot(h1.astype(bf16), params["we2"], preferred_element_type=f32)
             + params["be2"])
    mu_r = h_enc[:, :L]
    sigma_r = jnp.exp(mu_r)
    z_full = h_enc.at[:, :L].set(mu_r + sigma_r * eps)
    h2 = jnp.maximum(
        jnp.dot(z_full.astype(bf16), params["wd1"], preferred_element_type=f32)
        + params["bd1"], 0.0)
    ref_out = (jnp.dot(h2.astype(bf16), params["wd2"], preferred_element_type=f32)
               + params["bd2"])

    assert jnp.allclose(out, ref_out, atol=2e-2, rtol=2e-2)
    assert jnp.allclose(z_mean, mu_r, atol=1e-2, rtol=1e-2)
    assert jnp.allclose(z_sigma, sigma_r, atol=1e-2, rtol=1e-2)

    print("KERNEL_OK")
</pallas_src>

<mosaic_0001>
module attributes {stable_mosaic.version = 11 : i64} {
  func.func @_vae_kernel(%arg0: i32, %arg1: memref<256x128xbf16, #tpu.memory_space<vmem>>, %arg2: memref<128x128xbf16, #tpu.memory_space<vmem>>, %arg3: memref<1x128xf32, #tpu.memory_space<vmem>>, %arg4: memref<128x128xbf16, #tpu.memory_space<vmem>>, %arg5: memref<1x128xf32, #tpu.memory_space<vmem>>, %arg6: memref<128x128xbf16, #tpu.memory_space<vmem>>, %arg7: memref<1x128xf32, #tpu.memory_space<vmem>>, %arg8: memref<128x128xbf16, #tpu.memory_space<vmem>>, %arg9: memref<1x128xf32, #tpu.memory_space<vmem>>, %arg10: memref<256x8xf32, #tpu.memory_space<vmem>>, %arg11: memref<256x128xf32, #tpu.memory_space<vmem>>, %arg12: memref<256x8xf32, #tpu.memory_space<vmem>>, %arg13: memref<256x128xf32, #tpu.memory_space<vmem>>) attributes {dimension_semantics = [#tpu.dimension_semantics<parallel>], iteration_bounds = array<i64: 1>, scalar_prefetch = 0 : i64, scratch_operands = 1 : i64, tpu.core_type = #tpu.core_type<tc>, window_params = [{transform_indices = @transform_0, window_bounds = array<i64: 256, 128>}, {pipeline_mode = #tpu.pipeline_mode<synchronous>, transform_indices = @transform_1, window_bounds = array<i64: 128, 128>}, {pipeline_mode = #tpu.pipeline_mode<synchronous>, transform_indices = @transform_2, window_bounds = array<i64: 1, 128>}, {pipeline_mode = #tpu.pipeline_mode<synchronous>, transform_indices = @transform_3, window_bounds = array<i64: 128, 128>}, {pipeline_mode = #tpu.pipeline_mode<synchronous>, transform_indices = @transform_4, window_bounds = array<i64: 1, 128>}, {pipeline_mode = #tpu.pipeline_mode<synchronous>, transform_indices = @transform_5, window_bounds = array<i64: 128, 128>}, {pipeline_mode = #tpu.pipeline_mode<synchronous>, transform_indices = @transform_6, window_bounds = array<i64: 1, 128>}, {pipeline_mode = #tpu.pipeline_mode<synchronous>, transform_indices = @transform_7, window_bounds = array<i64: 128, 128>}, {pipeline_mode = #tpu.pipeline_mode<synchronous>, transform_indices = @transform_8, window_bounds = array<i64: 1, 128>}, {transform_indices = @transform_9, window_bounds = array<i64: 256, 8>}, {transform_indices = @transform_10, window_bounds = array<i64: 256, 128>}, {transform_indices = @transform_11, window_bounds = array<i64: 256, 8>}]} {
    %c0 = arith.constant 0 : index
    %c0_0 = arith.constant 0 : index
    %0 = vector.load %arg1[%c0, %c0_0] : memref<256x128xbf16, #tpu.memory_space<vmem>>, vector<256x128xbf16>
    %c0_1 = arith.constant 0 : index
    %c0_2 = arith.constant 0 : index
    %1 = vector.load %arg2[%c0_1, %c0_2] : memref<128x128xbf16, #tpu.memory_space<vmem>>, vector<128x128xbf16>
    %cst = arith.constant dense<0.000000e+00> : vector<256x128xf32>
    %2 = tpu.matmul %0, %1, %cst {dimension_numbers = #tpu.dot_dimension_numbers<[1], [0], [0], [1], [0, 0, 1, 1], [], []>} : vector<256x128xbf16>, vector<128x128xbf16>, vector<256x128xf32> -> vector<256x128xf32>
    %c0_3 = arith.constant 0 : index
    %c0_4 = arith.constant 0 : index
    %3 = vector.load %arg3[%c0_3, %c0_4] : memref<1x128xf32, #tpu.memory_space<vmem>>, vector<1x128xf32>
    %4 = vector.broadcast %3 : vector<1x128xf32> to vector<256x128xf32>
    %5 = arith.addf %2, %4 : vector<256x128xf32>
    %cst_5 = arith.constant 0.000000e+00 : f32
    %6 = vector.broadcast %cst_5 : f32 to vector<256x128xf32>
    %7 = arith.maximumf %5, %6 : vector<256x128xf32>
    %8 = arith.truncf %7 : vector<256x128xf32> to vector<256x128xbf16>
    %c0_6 = arith.constant 0 : index
    %c0_7 = arith.constant 0 : index
    %9 = vector.load %arg4[%c0_6, %c0_7] : memref<128x128xbf16, #tpu.memory_space<vmem>>, vector<128x128xbf16>
    %cst_8 = arith.constant dense<0.000000e+00> : vector<256x128xf32>
    %10 = tpu.matmul %8, %9, %cst_8 {dimension_numbers = #tpu.dot_dimension_numbers<[1], [0], [0], [1], [0, 0, 1, 1], [], []>} : vector<256x128xbf16>, vector<128x128xbf16>, vector<256x128xf32> -> vector<256x128xf32>
    %c0_9 = arith.constant 0 : index
    %c0_10 = arith.constant 0 : index
    %11 = vector.load %arg5[%c0_9, %c0_10] : memref<1x128xf32, #tpu.memory_space<vmem>>, vector<1x128xf32>
    %12 = vector.broadcast %11 : vector<1x128xf32> to vector<256x128xf32>
    %13 = arith.addf %10, %12 : vector<256x128xf32>
    %14 = vector.extract_strided_slice %13 {offsets = [0, 0], sizes = [256, 8], strides = [1, 1]} : vector<256x128xf32> to vector<256x8xf32>
    %15 = math.exp %14 : vector<256x8xf32>
    %c0_11 = arith.constant 0 : index
    %c0_12 = arith.constant 0 : index
    %16 = vector.load %arg10[%c0_11, %c0_12] : memref<256x8xf32, #tpu.memory_space<vmem>>, vector<256x8xf32>
    %17 = arith.mulf %15, %16 : vector<256x8xf32>
    %18 = arith.addf %14, %17 : vector<256x8xf32>
    %c0_13 = arith.constant 0 : index
    %c0_14 = arith.constant 0 : index
    %19 = vector.load %arg13[%c0_13, %c0_14] : memref<256x128xf32, #tpu.memory_space<vmem>>, vector<256x128xf32>
    tpu.vector_store %arg13[%c0_13, %c0_14], %13 {strides = array<i32>} : memref<256x128xf32, #tpu.memory_space<vmem>>, vector<256x128xf32>,
    %c0_15 = arith.constant 0 : index
    %c0_16 = arith.constant 0 : index
    %20 = vector.load %arg13[%c0_15, %c0_16] : memref<256x128xf32, #tpu.memory_space<vmem>>, vector<256x8xf32>
    tpu.vector_store %arg13[%c0_15, %c0_16], %18 {strides = array<i32>} : memref<256x128xf32, #tpu.memory_space<vmem>>, vector<256x8xf32>,
    %c0_17 = arith.constant 0 : index
    %c0_18 = arith.constant 0 : index
    %21 = vector.load %arg13[%c0_17, %c0_18] : memref<256x128xf32, #tpu.memory_space<vmem>>, vector<256x128xf32>
    %22 = arith.truncf %21 : vector<256x128xf32> to vector<256x128xbf16>
    %c0_19 = arith.constant 0 : index
    %c0_20 = arith.constant 0 : index
    %23 = vector.load %arg6[%c0_19, %c0_20] : memref<128x128xbf16, #tpu.memory_space<vmem>>, vector<128x128xbf16>
    %cst_21 = arith.constant dense<0.000000e+00> : vector<256x128xf32>
    %24 = tpu.matmul %22, %23, %cst_21 {dimension_numbers = #tpu.dot_dimension_numbers<[1], [0], [0], [1], [0, 0, 1, 1], [], []>} : vector<256x128xbf16>, vector<128x128xbf16>, vector<256x128xf32> -> vector<256x128xf32>
    %c0_22 = arith.constant 0 : index
    %c0_23 = arith.constant 0 : index
    %25 = vector.load %arg7[%c0_22, %c0_23] : memref<1x128xf32, #tpu.memory_space<vmem>>, vector<1x128xf32>
    %26 = vector.broadcast %25 : vector<1x128xf32> to vector<256x128xf32>
    %27 = arith.addf %24, %26 : vector<256x128xf32>
    %cst_24 = arith.constant 0.000000e+00 : f32
    %28 = vector.broadcast %cst_24 : f32 to vector<256x128xf32>
    %29 = arith.maximumf %27, %28 : vector<256x128xf32>
    %30 = arith.truncf %29 : vector<256x128xf32> to vector<256x128xbf16>
    %c0_25 = arith.constant 0 : index
    %c0_26 = arith.constant 0 : index
    %31 = vector.load %arg8[%c0_25, %c0_26] : memref<128x128xbf16, #tpu.memory_space<vmem>>, vector<128x128xbf16>
    %cst_27 = arith.constant dense<0.000000e+00> : vector<256x128xf32>
    %32 = tpu.matmul %30, %31, %cst_27 {dimension_numbers = #tpu.dot_dimension_numbers<[1], [0], [0], [1], [0, 0, 1, 1], [], []>} : vector<256x128xbf16>, vector<128x128xbf16>, vector<256x128xf32> -> vector<256x128xf32>
    %c0_28 = arith.constant 0 : index
    %c0_29 = arith.constant 0 : index
    %33 = vector.load %arg9[%c0_28, %c0_29] : memref<1x128xf32, #tpu.memory_space<vmem>>, vector<1x128xf32>
    %34 = vector.broadcast %33 : vector<1x128xf32> to vector<256x128xf32>
    %35 = arith.addf %32, %34 : vector<256x128xf32>
    %c0_30 = arith.constant 0 : index
    %c0_31 = arith.constant 0 : index
    %36 = vector.load %arg11[%c0_30, %c0_31] : memref<256x128xf32, #tpu.memory_space<vmem>>, vector<256x128xf32>
    tpu.vector_store %arg11[%c0_30, %c0_31], %35 {strides = array<i32>} : memref<256x128xf32, #tpu.memory_space<vmem>>, vector<256x128xf32>,
    %c0_32 = arith.constant 0 : index
    %c0_33 = arith.constant 0 : index
    %37 = vector.load %arg12[%c0_32, %c0_33] : memref<256x8xf32, #tpu.memory_space<vmem>>, vector<256x8xf32>
    tpu.vector_store %arg12[%c0_32, %c0_33], %14 {strides = array<i32>} : memref<256x8xf32, #tpu.memory_space<vmem>>, vector<256x8xf32>,
    return
  }
  func.func @transform_0(%arg0: i32) -> (i32, i32) {
    %c0_i32 = arith.constant 0 : i32
    %c0_i32_0 = arith.constant 0 : i32
    return %arg0, %c0_i32 : i32, i32
  }
  func.func @transform_1(%arg0: i32) -> (i32, i32) {
    %c0_i32 = arith.constant 0 : i32
    %c0_i32_0 = arith.constant 0 : i32
    %c0_i32_1 = arith.constant 0 : i32
    return %c0_i32, %c0_i32_0 : i32, i32
  }
  func.func @transform_2(%arg0: i32) -> (i32, i32) {
    %c0_i32 = arith.constant 0 : i32
    %c0_i32_0 = arith.constant 0 : i32
    %c0_i32_1 = arith.constant 0 : i32
    return %c0_i32, %c0_i32_0 : i32, i32
  }
  func.func @transform_3(%arg0: i32) -> (i32, i32) {
    %c0_i32 = arith.constant 0 : i32
    %c0_i32_0 = arith.constant 0 : i32
    %c0_i32_1 = arith.constant 0 : i32
    return %c0_i32, %c0_i32_0 : i32, i32
  }
  func.func @transform_4(%arg0: i32) -> (i32, i32) {
    %c0_i32 = arith.constant 0 : i32
    %c0_i32_0 = arith.constant 0 : i32
    %c0_i32_1 = arith.constant 0 : i32
    return %c0_i32, %c0_i32_0 : i32, i32
  }
  func.func @transform_5(%arg0: i32) -> (i32, i32) {
    %c0_i32 = arith.constant 0 : i32
    %c0_i32_0 = arith.constant 0 : i32
    %c0_i32_1 = arith.constant 0 : i32
    return %c0_i32, %c0_i32_0 : i32, i32
  }
  func.func @transform_6(%arg0: i32) -> (i32, i32) {
    %c0_i32 = arith.constant 0 : i32
    %c0_i32_0 = arith.constant 0 : i32
    %c0_i32_1 = arith.constant 0 : i32
    return %c0_i32, %c0_i32_0 : i32, i32
  }
  func.func @transform_7(%arg0: i32) -> (i32, i32) {
    %c0_i32 = arith.constant 0 : i32
    %c0_i32_0 = arith.constant 0 : i32
    %c0_i32_1 = arith.constant 0 : i32
    return %c0_i32, %c0_i32_0 : i32, i32
  }
  func.func @transform_8(%arg0: i32) -> (i32, i32) {
    %c0_i32 = arith.constant 0 : i32
    %c0_i32_0 = arith.constant 0 : i32
    %c0_i32_1 = arith.constant 0 : i32
    return %c0_i32, %c0_i32_0 : i32, i32
  }
  func.func @transform_9(%arg0: i32) -> (i32, i32) {
    %c0_i32 = arith.constant 0 : i32
    %c0_i32_0 = arith.constant 0 : i32
    return %arg0, %c0_i32 : i32, i32
  }
  func.func @transform_10(%arg0: i32) -> (i32, i32) {
    %c0_i32 = arith.constant 0 : i32
    %c0_i32_0 = arith.constant 0 : i32
    return %arg0, %c0_i32 : i32, i32
  }
  func.func @transform_11(%arg0: i32) -> (i32, i32) {
    %c0_i32 = arith.constant 0 : i32
    %c0_i32_0 = arith.constant 0 : i32
    return %arg0, %c0_i32 : i32, i32
  }
}

</mosaic_0001>

<bundles_post_ra>
// kernel: vae_forward.1
= control target key start
LH: loop header
LB: loop body
LE: loop exit
PB: predicated region body
PF: predicated region fallthrough
CT: control target
= control target key end

     0   :  { %17 = vsyncpa [#allocation4], 0  ;;  %s2892_s0 = inlined_call_operand.vmem [shape: bf16[256,128], index: 0, kind: input, shape index: {}]   ;;  %s2893_s1 = inlined_call_operand.vmem [shape: bf16[128,128], index: 1, kind: input, shape index: {}]   ;;  %s2894_s2 = inlined_call_operand.vmem [shape: f32[1,128], index: 2, kind: input, shape index: {}]   ;;  %s2895_s3 = inlined_call_operand.vmem [shape: bf16[128,128], index: 3, kind: input, shape index: {}]   ;;  %s2896_s4 = inlined_call_operand.vmem [shape: f32[1,128], index: 4, kind: input, shape index: {}]   ;;  %s2897_s5 = inlined_call_operand.hbm [shape: bf16[128,128], index: 5, kind: input, shape index: {}]   ;;  %s2898_s6 = inlined_call_operand.vmem [shape: f32[1,128], index: 6, kind: input, shape index: {}]   ;;  %s2899_s7 = inlined_call_operand.hbm [shape: bf16[128,128], index: 7, kind: input, shape index: {}]   ;;  %s2900_s8 = inlined_call_operand.vmem [shape: f32[1,128], index: 8, kind: input, shape index: {}]   ;;  %s2901_s9 = inlined_call_operand.vmem [shape: f32[256,8], index: 9, kind: input, shape index: {}]   ;;  %s2902_s10 = inlined_call_operand.hbm [shape: f32[256,128], index: 10, kind: output, shape index: {0}]   ;;  %s2903_s11 = inlined_call_operand.vmem [shape: f32[256,8], index: 11, kind: output, shape index: {1}]  }
   0x1   :  { %18 = vsyncpa [#allocation7], 0 }
   0x2   :  { %19 = vsyncpa [#allocation5], 0  ;;  %s2109_s17 = smov [#allocation3]   ;;  %s2037_s21 = scalar_lea.hbm %s2897_s5, 1024 }
   0x3   :  { %s35_s18 = sshll.u32 %s2109_s17, 4  ;;  %p2038_p0 = scmp.ne.s32.totalorder %s2897_s5, %s2037_s21  ;;  %s36_s18 = int_to_ptr.vmem [resolvable:$true] %s35_s18 }
   0x4   :  { %p2041_p1 = scmp.lt.u32.totalorder %s2037_s21, %s2897_s5 }
   0x6   :  { %p2043_p2 = pnand %p2041_p1, %p2038_p0 }
   0x8   :  { %2046 = shalt.err (!%p2043_p2)
}
   0x9   :  { %s2047_s26 = scalar_lea.vmem %s36_s18, 1024  ;;  %p2052_p4 = scmp.lt.s32.totalorder %s36_s18, %s36_s18 }
   0xa   :  { %p2048_p3 = scmp.ne.s32.totalorder %s36_s18, %s2047_s26  ;;  %p2053_p5 = scmp.lt.s32.totalorder %s2047_s26, %s2047_s26 }
   0xc   :  { %p2054_p6 = por %p2053_p5, %p2052_p4 }
   0xe   :  { %p2055_p7 = pnand %p2054_p6, %p2048_p3 }
  0x10   :  { %2058 = shalt.err (!%p2055_p7)
}
  0x11   :  { %s2110_s27 = smov 64   ;;  %s2111_s28 = smov 4  }
  0x12   :  { %41 = dma.hbm_to_vmem [thread:$0]  %s2897_s5, 1024, %s36_s18, [#allocation4], %s2110_s27, %s2110_s27, %s2111_s28  }
  0x13   :  { %s2112_s12 = smov [#allocation6]   ;;  %s2059_s16 = scalar_lea.hbm %s2899_s7, 1024 }
  0x14   :  { %s49_s13 = sshll.u32 %s2112_s12, 4  ;;  %p2060_p8 = scmp.ne.s32.totalorder %s2899_s7, %s2059_s16  ;;  %s50_s13 = int_to_ptr.vmem [resolvable:$true] %s49_s13 }
  0x15   :  { %p2063_p9 = scmp.lt.u32.totalorder %s2059_s16, %s2899_s7 }
  0x17   :  { %p2065_p10 = pnand %p2063_p9, %p2060_p8 }
  0x19   :  { %2068 = shalt.err (!%p2065_p10)
}
  0x1a   :  { %s2069_s22 = scalar_lea.vmem %s50_s13, 1024  ;;  %p2074_p12 = scmp.lt.s32.totalorder %s50_s13, %s50_s13 }
  0x1b   :  { %p2070_p11 = scmp.ne.s32.totalorder %s50_s13, %s2069_s22  ;;  %p2075_p13 = scmp.lt.s32.totalorder %s2069_s22, %s2069_s22 }
  0x1d   :  { %p2076_p0 = por %p2075_p13, %p2074_p12 }
  0x1f   :  { %p2077_p1 = pnand %p2076_p0, %p2070_p11 }
  0x21   :  { %2080 = shalt.err (!%p2077_p1)
}
  0x22   :  { %55 = dma.hbm_to_vmem [thread:$0]  %s2899_s7, 1024, %s50_s13, [#allocation7], %s2110_s27, %s2110_s27, %s2111_s28  }
  0x23   :  { %2103 = dma.done.wait [#allocation4], 1024  }
  0x24   :  { %2104 = vsyncadd [#allocation4], 4294966272 }
  0x25   :  { %2105 = dma.done.wait [#allocation7], 1024  }
  0x26   :  { %2106 = vsyncadd [#allocation7], 4294966272  ;;  %v1925_v0 = vld [vmem:[%s2893_s1] sm:$0xff]   ;;  %v1926_v1 = vld [vmem:[%s2893_s1 + $0x8] sm:$0xff]   ;;  %vm899_vm0 = vcmask 64512  }
  0x27   :  { %1726 = vmatprep.subr.bf16.mxu0 %v1925_v0  ;;  %v1927_v2 = vld [vmem:[%s2893_s1 + $0x10] sm:$0xff]   ;;  %v1928_v3 = vld [vmem:[%s2893_s1 + $0x18] sm:$0xff]   ;;  %v1933_v4 = vld [vmem:[%s2892_s0] sm:$0xff]  }
  0x28   :  { %1727 = vmatpush3.bf16.msra.mxu0 %v1925_v0  ;;  %1742 = vmatprep.mubr.bf16.mxu0 %v1933_v4  ;;  %v1929_v5 = vld [vmem:[%s2893_s1 + $0x20] sm:$0xff]   ;;  %v1930_v6 = vld [vmem:[%s2893_s1 + $0x28] sm:$0xff]   ;;  %v1931_v7 = vld [vmem:[%s2893_s1 + $0x30] sm:$0xff]  }
  0x29   :  { %1728 = vmatprep.subr.bf16.mxu0 %v1926_v1  ;;  %v1932_v8 = vld [vmem:[%s2893_s1 + $0x38] sm:$0xff]   ;;  %v1949_v9 = vld [vmem:[%s2895_s3] sm:$0xff]   ;;  %v1950_v10 = vld [vmem:[%s2895_s3 + $0x8] sm:$0xff]  }
  0x2a   :  { %1774 = vmatprep.subr.bf16.mxu1 %v1949_v9  ;;  %v1934_v11 = vld [vmem:[%s2892_s0 + $0x8] sm:$0xff]   ;;  %v1951_v12 = vld [vmem:[%s2895_s3 + $0x10] sm:$0xff]   ;;  %v1952_v14 = vld [vmem:[%s2895_s3 + $0x18] sm:$0xff]  }
  0x2b   :  { %1775 = vmatpush3.bf16.msra.mxu1 %v1949_v9  ;;  %v1935_v13 = vld [vmem:[%s2892_s0 + $0x10] sm:$0xff]   ;;  %v1953_v15 = vld [vmem:[%s2895_s3 + $0x20] sm:$0xff]   ;;  %v1936_v16 = vld [vmem:[%s2892_s0 + $0x18] sm:$0xff]  }
  0x2c   :  { %1729 = vmatpush3.bf16.msra.mxu0 %v1926_v1  ;;  %1776 = vmatprep.subr.bf16.mxu1 %v1950_v10  ;;  %v1937_v17 = vld [vmem:[%s2892_s0 + $0x20] sm:$0xff]   ;;  %v1954_v18 = vld [vmem:[%s2895_s3 + $0x28] sm:$0xff]   ;;  %v1939_v20 = vld [vmem:[%s2892_s0 + $0x30] sm:$0xff]  }
  0x2d   :  { %1730 = vmatprep.subr.bf16.mxu0 %v1927_v2  ;;  %v1938_v19 = vld [vmem:[%s2892_s0 + $0x28] sm:$0xff]   ;;  %v1940_v21 = vld [vmem:[%s2892_s0 + $0x38] sm:$0xff]   ;;  %v1941_v22 = vld [vmem:[%s2892_s0 + $0x40] sm:$0xff]  }
  0x2e   :  { %v1942_v23 = vld [vmem:[%s2892_s0 + $0x48] sm:$0xff]   ;;  %v1943_v24 = vld [vmem:[%s2892_s0 + $0x50] sm:$0xff]   ;;  %v1944_v25 = vld [vmem:[%s2892_s0 + $0x58] sm:$0xff]  }
  0x2f   :  { %1777 = vmatpush3.bf16.msra.mxu1 %v1950_v10  ;;  %v1945_v26 = vld [vmem:[%s2892_s0 + $0x60] sm:$0xff]   ;;  %v1946_v27 = vld [vmem:[%s2892_s0 + $0x68] sm:$0xff]   ;;  %v1947_v28 = vld [vmem:[%s2892_s0 + $0x70] sm:$0xff]  }
  0x30   :  { %1731 = vmatpush3.bf16.msra.mxu0 %v1927_v2  ;;  %1778 = vmatprep.subr.bf16.mxu1 %v1951_v12  ;;  %v1948_v29 = vld [vmem:[%s2892_s0 + $0x78] sm:$0xff]   ;;  %v1955_v30 = vld [vmem:[%s2895_s3 + $0x30] sm:$0xff]   ;;  %v1957_v32 = vld [vmem:[#allocation3] sm:$0xff]  }
  0x31   :  { %1732 = vmatprep.subr.bf16.mxu0 %v1928_v3  ;;  %v1956_v31 = vld [vmem:[%s2895_s3 + $0x38] sm:$0xff]   ;;  %v1958_v33 = vld [vmem:[#allocation3 + $0x8] sm:$0xff]   ;;  %v1959_v34 = vld [vmem:[#allocation3 + $0x10] sm:$0xff]  }
  0x32   :  { %v1960_v35 = vld [vmem:[#allocation3 + $0x18] sm:$0xff]   ;;  %v2299_v36 = vld [vmem:[%s2894_s2] ss:$0 sm:$0xff] }
  0x33   :  { %1779 = vmatpush3.bf16.msra.mxu1 %v1951_v12 }
  0x34   :  { %1733 = vmatpush3.bf16.msra.mxu0 %v1928_v3  ;;  %1780 = vmatprep.subr.bf16.mxu1 %v1952_v14 }
  0x35   :  { %1734 = vmatprep.subr.bf16.mxu0 %v1929_v5 }
  0x37   :  { %1781 = vmatpush3.bf16.msra.mxu1 %v1952_v14 }
  0x38   :  { %1735 = vmatpush3.bf16.msra.mxu0 %v1929_v5  ;;  %1782 = vmatprep.subr.bf16.mxu1 %v1953_v15 }
  0x39   :  { %1736 = vmatprep.subr.bf16.mxu0 %v1930_v6 }
  0x3b   :  { %1783 = vmatpush3.bf16.msra.mxu1 %v1953_v15 }
  0x3c   :  { %1737 = vmatpush3.bf16.msra.mxu0 %v1930_v6  ;;  %1784 = vmatprep.subr.bf16.mxu1 %v1954_v18 }
  0x3d   :  { %1738 = vmatprep.subr.bf16.mxu0 %v1931_v7 }
  0x3f   :  { %1785 = vmatpush3.bf16.msra.mxu1 %v1954_v18 }
  0x40   :  { %1739 = vmatpush3.bf16.msra.mxu0 %v1931_v7  ;;  %1786 = vmatprep.subr.bf16.mxu1 %v1955_v30 }
  0x41   :  { %1740 = vmatprep.subr.bf16.mxu0 %v1932_v8 }
  0x43   :  { %1787 = vmatpush3.bf16.msra.mxu1 %v1955_v30 }
  0x44   :  { %1741 = vmatpush3.bf16.msra.mxu0 %v1932_v8  ;;  %1788 = vmatprep.subr.bf16.mxu1 %v1956_v31 }
  0x45   :  { %1822 = vmatprep.subr.bf16.mxu0 %v1957_v32 }
  0x47   :  { %1743 = vmatmul.mubr.bf16.vlgmr.msra.gmra.mrb[0].mxu0 %v1934_v11  ;;  %1789 = vmatpush3.bf16.msra.mxu1 %v1956_v31 }
  0x48   :  { %1746 = vmatprep.mubr.bf16.mxu0 %v1935_v13  ;;  %1823 = vmatpush3.bf16.msra.mxu0 %v1957_v32 }
  0x49   :  { %1824 = vmatprep.subr.bf16.mxu0 %v1958_v33 }
  0x4c   :  { %1825 = vmatpush3.bf16.msra.mxu0 %v1958_v33 }
  0x4d   :  { %1826 = vmatprep.subr.bf16.mxu0 %v1959_v34 }
  0x4f   :  { %1747 = vmatmul.mubr.bf16.gmra.mrb[4].mxu0 %v1936_v16 }
  0x50   :  { %1750 = vmatprep.mubr.bf16.mxu0 %v1937_v17  ;;  %1827 = vmatpush3.bf16.msra.mxu0 %v1959_v34 }
  0x51   :  { %1828 = vmatprep.subr.bf16.mxu0 %v1960_v35 }
  0x54   :  { %1829 = vmatpush3.bf16.msra.mxu0 %v1960_v35 }
  0x57   :  { %1751 = vmatmul.mubr.bf16.gmra.mrb[8].mxu0 %v1938_v19 }
  0x58   :  { %1754 = vmatprep.mubr.bf16.mxu0 %v1939_v20 }
  0x5f   :  { %1755 = vmatmul.mubr.bf16.gmra.mrb[12].mxu0 %v1940_v21 }
  0x60   :  { %1758 = vmatprep.mubr.bf16.mxu0 %v1941_v22 }
  0x67   :  { %1759 = vmatmul.mubr.bf16.gmra.mrb[16].mxu0 %v1942_v23 }
  0x68   :  { %1762 = vmatprep.mubr.bf16.mxu0 %v1943_v24 }
  0x6f   :  { %1763 = vmatmul.mubr.bf16.gmra.mrb[20].mxu0 %v1944_v25 }
  0x70   :  { %1766 = vmatprep.mubr.bf16.mxu0 %v1945_v26 }
  0x77   :  { %1767 = vmatmul.mubr.bf16.gmra.mrb[24].mxu0 %v1946_v27 }
  0x78   :  { %1770 = vmatprep.mubr.bf16.mxu0 %v1947_v28 }
  0x7f   :  { %1771 = vmatmul.mubr.bf16.gmra.mrb[28].mxu0 %v1948_v29 }
 0x11a   :  { %v1744_v37 = vpop.f32.mrb[0].mxu0 }
 0x11b   :  { %v309_v38 = vadd.f32 %v1744_v37, %v2299_v36  ;;  %v300_v39 = vpop.f32.mrb[1].mxu0 }
 0x11c   :  { %v301_v40 = vadd.f32 %v2299_v36, %v300_v39  ;;  %v1745_v41 = vpop.f32.mrb[2].mxu0 }
 0x11d   :  { %v312_v42 = vadd.f32 %v1745_v41, %v2299_v36  ;;  %v303_v43 = vpop.f32.mrb[3].mxu0  ;;  %v429_v45 = vmax.f32 %v309_v38, 0.0 }
 0x11e   :  { %v304_v44 = vadd.f32 %v2299_v36, %v303_v43  ;;  %v427_v47 = vmax.f32 %v301_v40, 0.0 }
 0x11f   :  { %v430_v46 = vmax.f32 %v312_v42, 0.0 }
 0x120   :  { %v428_v48 = vmax.f32 %v304_v44, 0.0 }
 0x121   :  { %v460_v49 = vpack.c.bf16 %v430_v46, %v429_v45 }
 0x122   :  { %v1748_v50 = vpop.f32.mrb[4].mxu0  ;;  %v459_v51 = vpack.c.bf16 %v428_v48, %v427_v47 }
 0x123   :  { %v325_v52 = vadd.f32 %v1748_v50, %v2299_v36  ;;  %v316_v53 = vpop.f32.mrb[5].mxu0 }
 0x124   :  { %v317_v54 = vadd.f32 %v2299_v36, %v316_v53  ;;  %v1749_v55 = vpop.f32.mrb[6].mxu0  ;;  %1790 = vmatprep.mubr.bf16.mxu1 %v459_v51 }
 0x125   :  { %v328_v56 = vadd.f32 %v1749_v55, %v2299_v36  ;;  %v319_v57 = vpop.f32.mrb[7].mxu0  ;;  %1791 = vmatmul.mubr.bf16.vlgmr.msra.gmra.mrb[0].mxu1 %v460_v49  ;;  %v433_v59 = vmax.f32 %v325_v52, 0.0 }
 0x126   :  { %v320_v58 = vadd.f32 %v2299_v36, %v319_v57  ;;  %v431_v61 = vmax.f32 %v317_v54, 0.0 }
 0x127   :  { %v434_v60 = vmax.f32 %v328_v56, 0.0 }
 0x128   :  { %v432_v62 = vmax.f32 %v320_v58, 0.0 }
 0x129   :  { %v462_v63 = vpack.c.bf16 %v434_v60, %v433_v59 }
 0x12a   :  { %v461_v0 = vpack.c.bf16 %v432_v62, %v431_v61  ;;  %v1752_v1 = vpop.f32.mrb[8].mxu0 }
 0x12b   :  { %v341_v2 = vadd.f32 %v1752_v1, %v2299_v36  ;;  %v332_v3 = vpop.f32.mrb[9].mxu0 }
 0x12c   :  { %v333_v4 = vadd.f32 %v2299_v36, %v332_v3  ;;  %v1753_v5 = vpop.f32.mrb[10].mxu0  ;;  %1794 = vmatprep.mubr.bf16.mxu1 %v461_v0 }
 0x12d   :  { %v344_v6 = vadd.f32 %v1753_v5, %v2299_v36  ;;  %v335_v7 = vpop.f32.mrb[11].mxu0  ;;  %1795 = vmatmul.mubr.bf16.gmra.mrb[4].mxu1 %v462_v63  ;;  %v437_v9 = vmax.f32 %v341_v2, 0.0 }
 0x12e   :  { %v336_v8 = vadd.f32 %v2299_v36, %v335_v7  ;;  %v435_v11 = vmax.f32 %v333_v4, 0.0 }
 0x12f   :  { %v438_v10 = vmax.f32 %v344_v6, 0.0 }
 0x130   :  { %v436_v12 = vmax.f32 %v336_v8, 0.0 }
 0x131   :  { %v464_v13 = vpack.c.bf16 %v438_v10, %v437_v9 }
 0x132   :  { %v463_v14 = vpack.c.bf16 %v436_v12, %v435_v11  ;;  %v1756_v15 = vpop.f32.mrb[12].mxu0 }
 0x133   :  { %v357_v16 = vadd.f32 %v1756_v15, %v2299_v36  ;;  %v348_v17 = vpop.f32.mrb[13].mxu0 }
 0x134   :  { %v349_v18 = vadd.f32 %v2299_v36, %v348_v17  ;;  %v1757_v19 = vpop.f32.mrb[14].mxu0  ;;  %1798 = vmatprep.mubr.bf16.mxu1 %v463_v14 }
 0x135   :  { %v360_v20 = vadd.f32 %v1757_v19, %v2299_v36  ;;  %v351_v21 = vpop.f32.mrb[15].mxu0  ;;  %1799 = vmatmul.mubr.bf16.gmra.mrb[8].mxu1 %v464_v13  ;;  %v441_v23 = vmax.f32 %v357_v16, 0.0 }
 0x136   :  { %v352_v22 = vadd.f32 %v2299_v36, %v351_v21  ;;  %v439_v25 = vmax.f32 %v349_v18, 0.0 }
 0x137   :  { %v442_v24 = vmax.f32 %v360_v20, 0.0 }
 0x138   :  { %v440_v26 = vmax.f32 %v352_v22, 0.0  ;;  %v1961_v22 = vld [vmem:[#allocation3 + $0x20] sm:$0xff]  }
 0x139   :  { %v466_v27 = vpack.c.bf16 %v442_v24, %v441_v23  ;;  %1830 = vmatprep.subr.bf16.mxu0 %v1961_v22  ;;  %v1962_v23 = vld [vmem:[#allocation3 + $0x28] sm:$0xff]   ;;  %v1963_v24 = vld [vmem:[#allocation3 + $0x30] sm:$0xff]  }
 0x13a   :  { %v465_v28 = vpack.c.bf16 %v440_v26, %v439_v25  ;;  %v1760_v29 = vpop.f32.mrb[16].mxu0  ;;  %1831 = vmatpush3.bf16.msra.mxu0 %v1961_v22  ;;  %v1964_v25 = vld [vmem:[#allocation3 + $0x38] sm:$0xff]   ;;  %v1966_v26 = vld [vmem:[#allocation6 + $0x8] sm:$0xff]   ;;  %v775_v22 = vld [vmem:[%s2901_s9 + $0x20] sm:$0xff] }
 0x13b   :  { %v373_v30 = vadd.f32 %v1760_v29, %v2299_v36  ;;  %v364_v31 = vpop.f32.mrb[17].mxu0  ;;  %1832 = vmatprep.subr.bf16.mxu0 %v1962_v23  ;;  %v1969_v29 = vld [vmem:[#allocation6 + $0x20] sm:$0xff]  }
 0x13c   :  { %v365_v32 = vadd.f32 %v2299_v36, %v364_v31  ;;  %v1761_v33 = vpop.f32.mrb[18].mxu0  ;;  %1802 = vmatprep.mubr.bf16.mxu1 %v465_v28  ;;  %v1968_v28 = vld [vmem:[#allocation6 + $0x18] sm:$0xff]   ;;  %v1971_v31 = vld [vmem:[#allocation6 + $0x30] sm:$0xff]  }
 0x13d   :  { %v376_v34 = vadd.f32 %v1761_v33, %v2299_v36  ;;  %v367_v35 = vpop.f32.mrb[19].mxu0  ;;  %1803 = vmatmul.mubr.bf16.gmra.mrb[12].mxu1 %v466_v27  ;;  %v445_v38 = vmax.f32 %v373_v30, 0.0  ;;  %v1967_v27 = vld [vmem:[#allocation6 + $0x10] sm:$0xff]   ;;  %v1970_v30 = vld [vmem:[#allocation6 + $0x28] sm:$0xff]  }
 0x13e   :  { %v368_v37 = vadd.f32 %v2299_v36, %v367_v35  ;;  %v443_v40 = vmax.f32 %v365_v32, 0.0  ;;  %1833 = vmatpush3.bf16.msra.mxu0 %v1962_v23  ;;  %v2336_v32 = vld [vmem:[%s2896_s4] ss:$0 sm:$0xff] }
 0x13f   :  { %v446_v39 = vmax.f32 %v376_v34, 0.0  ;;  %1834 = vmatprep.subr.bf16.mxu0 %v1963_v24 }
 0x140   :  { %v444_v41 = vmax.f32 %v368_v37, 0.0 }
 0x141   :  { %v468_v42 = vpack.c.bf16 %v446_v39, %v445_v38 }
 0x142   :  { %v467_v43 = vpack.c.bf16 %v444_v41, %v443_v40  ;;  %v1764_v44 = vpop.f32.mrb[20].mxu0  ;;  %1835 = vmatpush3.bf16.msra.mxu0 %v1963_v24 }
 0x143   :  { %v389_v45 = vadd.f32 %v1764_v44, %v2299_v36  ;;  %v380_v46 = vpop.f32.mrb[21].mxu0  ;;  %1836 = vmatprep.subr.bf16.mxu0 %v1964_v25 }
 0x144   :  { %v381_v47 = vadd.f32 %v2299_v36, %v380_v46  ;;  %v1765_v48 = vpop.f32.mrb[22].mxu0  ;;  %1806 = vmatprep.mubr.bf16.mxu1 %v467_v43 }
 0x145   :  { %v392_v49 = vadd.f32 %v1765_v48, %v2299_v36  ;;  %v383_v50 = vpop.f32.mrb[23].mxu0  ;;  %1807 = vmatmul.mubr.bf16.gmra.mrb[16].mxu1 %v468_v42  ;;  %v449_v52 = vmax.f32 %v389_v45, 0.0 }
 0x146   :  { %v384_v51 = vadd.f32 %v2299_v36, %v383_v50  ;;  %v447_v54 = vmax.f32 %v381_v47, 0.0  ;;  %1837 = vmatpush3.bf16.msra.mxu0 %v1964_v25  ;;  %v778_v25 = vld [vmem:[%s2901_s9 + $0x38] sm:$0xff] }
 0x147   :  { %v450_v53 = vmax.f32 %v392_v49, 0.0 }
 0x148   :  { %v448_v55 = vmax.f32 %v384_v51, 0.0 }
 0x149   :  { %v470_v56 = vpack.c.bf16 %v450_v53, %v449_v52 }
 0x14a   :  { %v469_v57 = vpack.c.bf16 %v448_v55, %v447_v54  ;;  %v1768_v58 = vpop.f32.mrb[24].mxu0 }
 0x14b   :  { %v405_v59 = vadd.f32 %v1768_v58, %v2299_v36  ;;  %v396_v60 = vpop.f32.mrb[25].mxu0  ;;  %v771_v58 = vld [vmem:[%s2901_s9] sm:$0xff] }
 0x14c   :  { %v397_v61 = vadd.f32 %v2299_v36, %v396_v60  ;;  %v1769_v62 = vpop.f32.mrb[26].mxu0  ;;  %1810 = vmatprep.mubr.bf16.mxu1 %v469_v57 }
 0x14d   :  { %v408_v63 = vadd.f32 %v1769_v62, %v2299_v36  ;;  %v399_v0 = vpop.f32.mrb[27].mxu0  ;;  %1811 = vmatmul.mubr.bf16.gmra.mrb[20].mxu1 %v470_v56  ;;  %v453_v2 = vmax.f32 %v405_v59, 0.0  ;;  %v773_v56 = vld [vmem:[%s2901_s9 + $0x10] sm:$0xff] }
 0x14e   :  { %v400_v1 = vadd.f32 %v2299_v36, %v399_v0  ;;  %v451_v4 = vmax.f32 %v397_v61, 0.0  ;;  %v774_v61 = vld [vmem:[%s2901_s9 + $0x18] sm:$0xff]  ;;  %v772_v0 = vld [vmem:[%s2901_s9 + $0x8] sm:$0xff] }
 0x14f   :  { %v454_v3 = vmax.f32 %v408_v63, 0.0 }
 0x150   :  { %v452_v5 = vmax.f32 %v400_v1, 0.0 }
 0x151   :  { %v472_v6 = vpack.c.bf16 %v454_v3, %v453_v2 }
 0x152   :  { %v471_v7 = vpack.c.bf16 %v452_v5, %v451_v4  ;;  %v1772_v8 = vpop.f32.mrb[28].mxu0 }
 0x153   :  { %v421_v9 = vadd.f32 %v1772_v8, %v2299_v36  ;;  %v412_v10 = vpop.f32.mrb[29].mxu0 }
 0x154   :  { %v413_v11 = vadd.f32 %v2299_v36, %v412_v10  ;;  %v1773_v12 = vpop.f32.mrb[30].mxu0  ;;  %1814 = vmatprep.mubr.bf16.mxu1 %v471_v7 }
 0x155   :  { %v424_v13 = vadd.f32 %v1773_v12, %v2299_v36  ;;  %v415_v14 = vpop.f32.mrb[31].mxu0  ;;  %1815 = vmatmul.mubr.bf16.gmra.mrb[24].mxu1 %v472_v6  ;;  %v457_v16 = vmax.f32 %v421_v9, 0.0 }
 0x156   :  { %v416_v15 = vadd.f32 %v2299_v36, %v415_v14  ;;  %v455_v18 = vmax.f32 %v413_v11, 0.0  ;;  %v1965_v36 = vld [vmem:[#allocation6] sm:$0xff]  }
 0x157   :  { %v458_v17 = vmax.f32 %v424_v13, 0.0  ;;  %1870 = vmatprep.subr.bf16.mxu1 %v1965_v36 }
 0x158   :  { %v456_v19 = vmax.f32 %v416_v15, 0.0  ;;  %1871 = vmatpush3.bf16.msra.mxu1 %v1965_v36 }
 0x159   :  { %v474_v20 = vpack.c.bf16 %v458_v17, %v457_v16  ;;  %1872 = vmatprep.subr.bf16.mxu1 %v1966_v26 }
 0x15a   :  { %v473_v21 = vpack.c.bf16 %v456_v19, %v455_v18 }
 0x15c   :  { %1818 = vmatprep.mubr.bf16.mxu1 %v473_v21  ;;  %1873 = vmatpush3.bf16.msra.mxu1 %v1966_v26 }
 0x15d   :  { %1819 = vmatmul.mubr.bf16.gmra.mrb[28].mxu1 %v474_v20  ;;  %1874 = vmatprep.subr.bf16.mxu1 %v1967_v27  ;;  %v777_v20 = vld [vmem:[%s2901_s9 + $0x30] sm:$0xff] }
 0x160   :  { %1875 = vmatpush3.bf16.msra.mxu1 %v1967_v27  ;;  %v776_v27 = vld [vmem:[%s2901_s9 + $0x28] sm:$0xff] }
 0x161   :  { %1876 = vmatprep.subr.bf16.mxu1 %v1968_v28 }
 0x164   :  { %1877 = vmatpush3.bf16.msra.mxu1 %v1968_v28 }
 0x165   :  { %1878 = vmatprep.subr.bf16.mxu1 %v1969_v29 }
 0x168   :  { %1879 = vmatpush3.bf16.msra.mxu1 %v1969_v29 }
 0x169   :  { %1880 = vmatprep.subr.bf16.mxu1 %v1970_v30 }
 0x16c   :  { %1881 = vmatpush3.bf16.msra.mxu1 %v1970_v30 }
 0x16d   :  { %1882 = vmatprep.subr.bf16.mxu1 %v1971_v31 }
 0x170   :  { %1883 = vmatpush3.bf16.msra.mxu1 %v1971_v31 }
 0x1f8   :  { %v1792_v33 = vpop.f32.mrb[0].mxu1 }
 0x1f9   :  { %v589_v34 = vadd.f32 %v1792_v33, %v2336_v32  ;;  %v580_v35 = vpop.f32.mrb[1].mxu1 }
 0x1fa   :  { %v581_v37 = vadd.f32 %v2336_v32, %v580_v35  ;;  %v1793_v38 = vpop.f32.mrb[2].mxu1 }
 0x1fb   :  { %v711_v39 = vmul.f32 1.442695, %v589_v34  ;;  %869 = vst [vmem:[#allocation2 + $0x10] sm:$0xff] %v589_v34  ;;  %1526 = vst.msk [vmem:[%s2903_s11 + $0x10] sm:$0xff] %vm899_vm0, %v589_v34  ;;  %v2345_v40 = vadd.f32 %v1793_v38, %v2336_v32  ;;  %v583_v41 = vpop.f32.mrb[3].mxu1 }
 0x1fc   :  { %v707_v42 = vmul.f32 1.442695, %v581_v37  ;;  %867 = vst [vmem:[#allocation2] sm:$0xff] %v581_v37  ;;  %1524 = vst.msk [vmem:[%s2903_s11] sm:$0xff] %vm899_vm0, %v581_v37  ;;  %v2352_v43 = vadd.f32 %v2336_v32, %v583_v41 }
 0x1fd   :  { %1973 = vpow2.f32 %v711_v39  ;;  %v713_v44 = vmul.f32 1.442695, %v2345_v40  ;;  %870 = vst [vmem:[#allocation2 + $0x18] sm:$0xff] %v2345_v40  ;;  %1527 = vst.msk [vmem:[%s2903_s11 + $0x18] sm:$0xff] %vm899_vm0, %v2345_v40 }
 0x1fe   :  { %1975 = vpow2.f32 %v707_v42  ;;  %v709_v45 = vmul.f32 1.442695, %v2352_v43  ;;  %868 = vst [vmem:[#allocation2 + $0x8] sm:$0xff] %v2352_v43  ;;  %1525 = vst.msk [vmem:[%s2903_s11 + $0x8] sm:$0xff] %vm899_vm0, %v2352_v43 }
 0x1ff   :  { %1977 = vpow2.f32 %v713_v44 }
 0x200   :  { %1979 = vpow2.f32 %v709_v45  ;;  %v1796_v46 = vpop.f32.mrb[4].mxu1 }
 0x201   :  { %v2369_v47 = vadd.f32 %v1796_v46, %v2336_v32  ;;  %v596_v48 = vpop.f32.mrb[5].mxu1 }
 0x202   :  { %v2372_v49 = vadd.f32 %v2336_v32, %v596_v48  ;;  %v1797_v50 = vpop.f32.mrb[6].mxu1 }
 0x203   :  { %v719_v51 = vmul.f32 1.442695, %v2369_v47  ;;  %873 = vst [vmem:[#allocation2 + $0x30] sm:$0xff] %v2369_v47  ;;  %1530 = vst.msk [vmem:[%s2903_s11 + $0x30] sm:$0xff] %vm899_vm0, %v2369_v47  ;;  %v2382_v52 = vadd.f32 %v1797_v50, %v2336_v32  ;;  %v599_v53 = vpop.f32.mrb[7].mxu1 }
 0x204   :  { %v715_v54 = vmul.f32 1.442695, %v2372_v49  ;;  %871 = vst [vmem:[#allocation2 + $0x20] sm:$0xff] %v2372_v49  ;;  %1528 = vst.msk [vmem:[%s2903_s11 + $0x20] sm:$0xff] %vm899_vm0, %v2372_v49  ;;  %v2392_v55 = vadd.f32 %v2336_v32, %v599_v53 }
 0x205   :  { %1981 = vpow2.f32 %v719_v51  ;;  %v721_v57 = vmul.f32 1.442695, %v2382_v52  ;;  %874 = vst [vmem:[#allocation2 + $0x38] sm:$0xff] %v2382_v52  ;;  %1531 = vst.msk [vmem:[%s2903_s11 + $0x38] sm:$0xff] %vm899_vm0, %v2382_v52 }
 0x206   :  { %1983 = vpow2.f32 %v715_v54  ;;  %v717_v59 = vmul.f32 1.442695, %v2392_v55  ;;  %872 = vst [vmem:[#allocation2 + $0x28] sm:$0xff] %v2392_v55  ;;  %1529 = vst.msk [vmem:[%s2903_s11 + $0x28] sm:$0xff] %vm899_vm0, %v2392_v55 }
 0x207   :  { %v1974_v60 = vpop.eup %1973  ;;  %1985 = vpow2.f32 %v721_v57  ;;  %v782_v57 = vld [vmem:[%s2901_s9 + $0x58] sm:$0xff] }
 0x208   :  { %v1976_v62 = vpop.eup %1975  ;;  %v805_v63 = vmul.f32 %v1974_v60, %v773_v56  ;;  %1987 = vpow2.f32 %v717_v59  ;;  %v1800_v1 = vpop.f32.mrb[8].mxu1 }
 0x209   :  { %v1978_v2 = vpop.eup %1977  ;;  %v803_v3 = vmul.f32 %v1976_v62, %v771_v58  ;;  %v2421_v4 = vadd.f32 %v1800_v1, %v2336_v32  ;;  %v612_v5 = vpop.f32.mrb[9].mxu1  ;;  %v780_v62 = vld [vmem:[%s2901_s9 + $0x48] sm:$0xff] }
 0x20a   :  { %v1980_v6 = vpop.eup %1979  ;;  %v837_v7 = vadd.f32 %v805_v63, %v589_v34  ;;  %v806_v8 = vmul.f32 %v1978_v2, %v774_v61  ;;  %v2424_v9 = vadd.f32 %v2336_v32, %v612_v5  ;;  %v1801_v10 = vpop.f32.mrb[10].mxu1 }
 0x20b   :  { %v835_v11 = vadd.f32 %v803_v3, %v581_v37  ;;  %v804_v12 = vmul.f32 %v1980_v6, %v772_v0  ;;  %v727_v13 = vmul.f32 1.442695, %v2421_v4  ;;  %877 = vst [vmem:[#allocation2 + $0x50] sm:$0xff] %v2421_v4  ;;  %1534 = vst.msk [vmem:[%s2903_s11 + $0x50] sm:$0xff] %vm899_vm0, %v2421_v4  ;;  %v2434_v14 = vadd.f32 %v1801_v10, %v2336_v32  ;;  %v615_v15 = vpop.f32.mrb[11].mxu1 }
 0x20c   :  { %902 = vst.msk [vmem:[#allocation2 + $0x10] sm:$0xff] %vm899_vm0, %v837_v7  ;;  %v838_v16 = vadd.f32 %v806_v8, %v2345_v40  ;;  %v723_v17 = vmul.f32 1.442695, %v2424_v9  ;;  %875 = vst [vmem:[#allocation2 + $0x40] sm:$0xff] %v2424_v9  ;;  %v2446_v18 = vadd.f32 %v2336_v32, %v615_v15 }
 0x20d   :  { %1532 = vst.msk [vmem:[%s2903_s11 + $0x40] sm:$0xff] %vm899_vm0, %v2424_v9  ;;  %900 = vst.msk [vmem:[#allocation2] sm:$0xff] %vm899_vm0, %v835_v11  ;;  %v836_v19 = vadd.f32 %v804_v12, %v2352_v43  ;;  %1989 = vpow2.f32 %v727_v13  ;;  %v729_v21 = vmul.f32 1.442695, %v2434_v14 }
 0x20e   :  { %878 = vst [vmem:[#allocation2 + $0x58] sm:$0xff] %v2434_v14  ;;  %1535 = vst.msk [vmem:[%s2903_s11 + $0x58] sm:$0xff] %vm899_vm0, %v2434_v14  ;;  %1991 = vpow2.f32 %v723_v17  ;;  %v725_v23 = vmul.f32 1.442695, %v2446_v18 }
 0x20f   :  { %903 = vst.msk [vmem:[#allocation2 + $0x18] sm:$0xff] %vm899_vm0, %v838_v16  ;;  %876 = vst [vmem:[#allocation2 + $0x48] sm:$0xff] %v2446_v18  ;;  %v1982_v24 = vpop.eup %1981  ;;  %1993 = vpow2.f32 %v729_v21 }
 0x210   :  { %1533 = vst.msk [vmem:[%s2903_s11 + $0x48] sm:$0xff] %vm899_vm0, %v2446_v18  ;;  %901 = vst.msk [vmem:[#allocation2 + $0x8] sm:$0xff] %vm899_vm0, %v836_v19  ;;  %v1984_v36 = vpop.eup %1983  ;;  %v809_v26 = vmul.f32 %v1982_v24, %v777_v20  ;;  %1995 = vpow2.f32 %v725_v23  ;;  %v1804_v28 = vpop.f32.mrb[12].mxu1 }
 0x211   :  { %v1986_v29 = vpop.eup %1985  ;;  %v807_v30 = vmul.f32 %v1984_v36, %v775_v22  ;;  %v2479_v31 = vadd.f32 %v1804_v28, %v2336_v32  ;;  %v628_v33 = vpop.f32.mrb[13].mxu1 }
 0x212   :  { %v1988_v34 = vpop.eup %1987  ;;  %v841_v35 = vadd.f32 %v809_v26, %v2369_v47  ;;  %v810_v37 = vmul.f32 %v1986_v29, %v778_v25  ;;  %v2483_v38 = vadd.f32 %v2336_v32, %v628_v33  ;;  %v1805_v39 = vpop.f32.mrb[14].mxu1  ;;  %v786_v26 = vld [vmem:[%s2901_s9 + $0x78] sm:$0xff]  ;;  %v784_v33 = vld [vmem:[%s2901_s9 + $0x68] sm:$0xff] }
 0x213   :  { %v839_v40 = vadd.f32 %v807_v30, %v2372_v49  ;;  %v808_v41 = vmul.f32 %v1988_v34, %v776_v27  ;;  %v735_v42 = vmul.f32 1.442695, %v2479_v31  ;;  %881 = vst [vmem:[#allocation2 + $0x70] sm:$0xff] %v2479_v31  ;;  %1538 = vst.msk [vmem:[%s2903_s11 + $0x70] sm:$0xff] %vm899_vm0, %v2479_v31  ;;  %v2494_v43 = vadd.f32 %v1805_v39, %v2336_v32  ;;  %v631_v44 = vpop.f32.mrb[15].mxu1  ;;  %v781_v49 = vld [vmem:[%s2901_s9 + $0x50] sm:$0xff] }
 0x214   :  { %906 = vst.msk [vmem:[#allocation2 + $0x30] sm:$0xff] %vm899_vm0, %v841_v35  ;;  %v842_v45 = vadd.f32 %v810_v37, %v2382_v52  ;;  %v731_v46 = vmul.f32 1.442695, %v2483_v38  ;;  %879 = vst [vmem:[#allocation2 + $0x60] sm:$0xff] %v2483_v38  ;;  %v2506_v47 = vadd.f32 %v2336_v32, %v631_v44  ;;  %v779_v52 = vld [vmem:[%s2901_s9 + $0x40] sm:$0xff]  ;;  %v934_v59 = vld [vmem:[#allocation2 + $0x10] sm:$0xff] }
 0x215   :  { %1536 = vst.msk [vmem:[%s2903_s11 + $0x60] sm:$0xff] %vm899_vm0, %v2483_v38  ;;  %904 = vst.msk [vmem:[#allocation2 + $0x20] sm:$0xff] %vm899_vm0, %v839_v40  ;;  %v840_v48 = vadd.f32 %v808_v41, %v2392_v55  ;;  %1997 = vpow2.f32 %v735_v42  ;;  %v737_v50 = vmul.f32 1.442695, %v2494_v43  ;;  %v932_v54 = vld [vmem:[#allocation2] sm:$0xff] }
 0x216   :  { %882 = vst [vmem:[#allocation2 + $0x78] sm:$0xff] %v2494_v43  ;;  %1539 = vst.msk [vmem:[%s2903_s11 + $0x78] sm:$0xff] %vm899_vm0, %v2494_v43  ;;  %v935_v51 = vld [vmem:[#allocation2 + $0x18] sm:$0xff]  ;;  %1999 = vpow2.f32 %v731_v46  ;;  %v733_v53 = vmul.f32 1.442695, %v2506_v47 }
 0x217   :  { %907 = vst.msk [vmem:[#allocation2 + $0x38] sm:$0xff] %vm899_vm0, %v842_v45  ;;  %880 = vst [vmem:[#allocation2 + $0x68] sm:$0xff] %v2506_v47  ;;  %v933_v55 = vld [vmem:[#allocation2 + $0x8] sm:$0xff]  ;;  %v1990_v56 = vpop.eup %1989  ;;  %2001 = vpow2.f32 %v737_v50  ;;  %v965_v0 = vpack.c.bf16 %v935_v51, %v934_v59 }
 0x218   :  { %1537 = vst.msk [vmem:[%s2903_s11 + $0x68] sm:$0xff] %vm899_vm0, %v2506_v47  ;;  %905 = vst.msk [vmem:[#allocation2 + $0x28] sm:$0xff] %vm899_vm0, %v840_v48  ;;  %v964_v58 = vpack.c.bf16 %v933_v55, %v932_v54  ;;  %v1992_v60 = vpop.eup %1991  ;;  %v813_v61 = vmul.f32 %v1990_v56, %v781_v49  ;;  %2003 = vpow2.f32 %v733_v53  ;;  %v1808_v63 = vpop.f32.mrb[16].mxu1 }
 0x219   :  { %v1994_v1 = vpop.eup %1993  ;;  %v811_v2 = vmul.f32 %v1992_v60, %v779_v52  ;;  %v2539_v3 = vadd.f32 %v1808_v63, %v2336_v32  ;;  %v644_v5 = vpop.f32.mrb[17].mxu1 }
 0x21a   :  { %1838 = vmatprep.mubr.bf16.mxu0 %v964_v58  ;;  %v1996_v6 = vpop.eup %1995  ;;  %v845_v7 = vadd.f32 %v813_v61, %v2421_v4  ;;  %v814_v8 = vmul.f32 %v1994_v1, %v782_v57  ;;  %v2543_v10 = vadd.f32 %v2336_v32, %v644_v5  ;;  %v1809_v11 = vpop.f32.mrb[18].mxu1  ;;  %v788_v5 = vld [vmem:[%s2901_s9 + $0x88] sm:$0xff] }
 0x21b   :  { %1839 = vmatmul.mubr.bf16.vlgmr.msra.gmra.mrb[32].mxu0 %v965_v0  ;;  %v843_v12 = vadd.f32 %v811_v2, %v2424_v9  ;;  %v812_v13 = vmul.f32 %v1996_v6, %v780_v62  ;;  %v743_v15 = vmul.f32 1.442695, %v2539_v3  ;;  %885 = vst [vmem:[#allocation2 + $0x90] sm:$0xff] %v2539_v3  ;;  %1542 = vst.msk [vmem:[%s2903_s11 + $0x90] sm:$0xff] %vm899_vm0, %v2539_v3  ;;  %v647_v16 = vpop.f32.mrb[19].mxu1  ;;  %v938_v28 = vld [vmem:[#allocation2 + $0x30] sm:$0xff] }
 0x21c   :  { %v2554_v4 = vadd.f32 %v1809_v11, %v2336_v32  ;;  %910 = vst.msk [vmem:[#allocation2 + $0x50] sm:$0xff] %vm899_vm0, %v845_v7  ;;  %v846_v17 = vadd.f32 %v814_v8, %v2434_v14  ;;  %v739_v9 = vmul.f32 1.442695, %v2543_v10  ;;  %883 = vst [vmem:[#allocation2 + $0x80] sm:$0xff] %v2543_v10  ;;  %v2566_v19 = vadd.f32 %v2336_v32, %v647_v16  ;;  %v785_v14 = vld [vmem:[%s2901_s9 + $0x70] sm:$0xff]  ;;  %v936_v24 = vld [vmem:[#allocation2 + $0x20] sm:$0xff] }
 0x21d   :  { %1540 = vst.msk [vmem:[%s2903_s11 + $0x80] sm:$0xff] %vm899_vm0, %v2543_v10  ;;  %908 = vst.msk [vmem:[#allocation2 + $0x40] sm:$0xff] %vm899_vm0, %v843_v12  ;;  %v844_v20 = vadd.f32 %v812_v13, %v2446_v18  ;;  %2005 = vpow2.f32 %v743_v15  ;;  %v783_v18 = vld [vmem:[%s2901_s9 + $0x60] sm:$0xff]  ;;  %v790_v62 = vld [vmem:[%s2901_s9 + $0x98] sm:$0xff] }
 0x21e   :  { %v745_v21 = vmul.f32 1.442695, %v2554_v4  ;;  %886 = vst [vmem:[#allocation2 + $0x98] sm:$0xff] %v2554_v4  ;;  %1543 = vst.msk [vmem:[%s2903_s11 + $0x98] sm:$0xff] %vm899_vm0, %v2554_v4  ;;  %v939_v22 = vld [vmem:[#allocation2 + $0x38] sm:$0xff]  ;;  %2007 = vpow2.f32 %v739_v9 }
 0x21f   :  { %911 = vst.msk [vmem:[#allocation2 + $0x58] sm:$0xff] %vm899_vm0, %v846_v17  ;;  %v741_v23 = vmul.f32 1.442695, %v2566_v19  ;;  %884 = vst [vmem:[#allocation2 + $0x88] sm:$0xff] %v2566_v19  ;;  %v937_v25 = vld [vmem:[#allocation2 + $0x28] sm:$0xff]  ;;  %v1998_v36 = vpop.eup %1997  ;;  %v967_v35 = vpack.c.bf16 %v939_v22, %v938_v28 }
 0x220   :  { %1541 = vst.msk [vmem:[%s2903_s11 + $0x88] sm:$0xff] %vm899_vm0, %v2566_v19  ;;  %909 = vst.msk [vmem:[#allocation2 + $0x48] sm:$0xff] %vm899_vm0, %v844_v20  ;;  %2009 = vpow2.f32 %v745_v21  ;;  %v966_v27 = vpack.c.bf16 %v937_v25, %v936_v24  ;;  %v2000_v29 = vpop.eup %1999  ;;  %v817_v30 = vmul.f32 %v1998_v36, %v785_v14  ;;  %v1812_v34 = vpop.f32.mrb[20].mxu1 }
 0x221   :  { %2011 = vpow2.f32 %v741_v23  ;;  %v2002_v37 = vpop.eup %2001  ;;  %v815_v39 = vmul.f32 %v2000_v29, %v783_v18  ;;  %v2599_v40 = vadd.f32 %v1812_v34, %v2336_v32  ;;  %v660_v41 = vpop.f32.mrb[21].mxu1 }
 0x222   :  { %1842 = vmatprep.mubr.bf16.mxu0 %v966_v27  ;;  %v2004_v42 = vpop.eup %2003  ;;  %v849_v44 = vadd.f32 %v817_v30, %v2479_v31  ;;  %v818_v45 = vmul.f32 %v2002_v37, %v786_v26  ;;  %v2603_v46 = vadd.f32 %v2336_v32, %v660_v41  ;;  %v1813_v48 = vpop.f32.mrb[22].mxu1  ;;  %v792_v41 = vld [vmem:[%s2901_s9 + $0xa8] sm:$0xff] }
 0x223   :  { %1843 = vmatmul.mubr.bf16.gmra.mrb[36].mxu0 %v967_v35  ;;  %v847_v49 = vadd.f32 %v815_v39, %v2483_v38  ;;  %v816_v50 = vmul.f32 %v2004_v42, %v784_v33  ;;  %v751_v51 = vmul.f32 1.442695, %v2599_v40  ;;  %889 = vst [vmem:[#allocation2 + $0xb0] sm:$0xff] %v2599_v40  ;;  %1546 = vst.msk [vmem:[%s2903_s11 + $0xb0] sm:$0xff] %vm899_vm0, %v2599_v40  ;;  %v663_v52 = vpop.f32.mrb[23].mxu1  ;;  %v942_v0 = vld [vmem:[#allocation2 + $0x50] sm:$0xff] }
 0x224   :  { %v2614_v31 = vadd.f32 %v1813_v48, %v2336_v32  ;;  %914 = vst.msk [vmem:[#allocation2 + $0x70] sm:$0xff] %vm899_vm0, %v849_v44  ;;  %v850_v53 = vadd.f32 %v818_v45, %v2494_v43  ;;  %v747_v38 = vmul.f32 1.442695, %v2603_v46  ;;  %887 = vst [vmem:[#allocation2 + $0xa0] sm:$0xff] %v2603_v46  ;;  %v2626_v54 = vadd.f32 %v2336_v32, %v663_v52  ;;  %v789_v43 = vld [vmem:[%s2901_s9 + $0x90] sm:$0xff]  ;;  %v940_v59 = vld [vmem:[#allocation2 + $0x40] sm:$0xff] }
 0x225   :  { %1544 = vst.msk [vmem:[%s2903_s11 + $0xa0] sm:$0xff] %vm899_vm0, %v2603_v46  ;;  %912 = vst.msk [vmem:[#allocation2 + $0x60] sm:$0xff] %vm899_vm0, %v847_v49  ;;  %v848_v55 = vadd.f32 %v816_v50, %v2506_v47  ;;  %2013 = vpow2.f32 %v751_v51  ;;  %v787_v47 = vld [vmem:[%s2901_s9 + $0x80] sm:$0xff]  ;;  %v794_v33 = vld [vmem:[%s2901_s9 + $0xb8] sm:$0xff] }
 0x226   :  { %v753_v56 = vmul.f32 1.442695, %v2614_v31  ;;  %890 = vst [vmem:[#allocation2 + $0xb8] sm:$0xff] %v2614_v31  ;;  %1547 = vst.msk [vmem:[%s2903_s11 + $0xb8] sm:$0xff] %vm899_vm0, %v2614_v31  ;;  %v943_v57 = vld [vmem:[#allocation2 + $0x58] sm:$0xff]  ;;  %2015 = vpow2.f32 %v747_v38 }
 0x227   :  { %915 = vst.msk [vmem:[#allocation2 + $0x78] sm:$0xff] %vm899_vm0, %v850_v53  ;;  %v749_v58 = vmul.f32 1.442695, %v2626_v54  ;;  %888 = vst [vmem:[#allocation2 + $0xa8] sm:$0xff] %v2626_v54  ;;  %v941_v60 = vld [vmem:[#allocation2 + $0x48] sm:$0xff]  ;;  %v2006_v61 = vpop.eup %2005  ;;  %v969_v7 = vpack.c.bf16 %v943_v57, %v942_v0 }
 0x228   :  { %1545 = vst.msk [vmem:[%s2903_s11 + $0xa8] sm:$0xff] %vm899_vm0, %v2626_v54  ;;  %913 = vst.msk [vmem:[#allocation2 + $0x68] sm:$0xff] %vm899_vm0, %v848_v55  ;;  %2017 = vpow2.f32 %v753_v56  ;;  %v968_v63 = vpack.c.bf16 %v941_v60, %v940_v59  ;;  %v2008_v1 = vpop.eup %2007  ;;  %v821_v2 = vmul.f32 %v2006_v61, %v789_v43  ;;  %v1816_v6 = vpop.f32.mrb[24].mxu1 }
 0x229   :  { %2019 = vpow2.f32 %v749_v58  ;;  %v819_v11 = vmul.f32 %v2008_v1, %v787_v47  ;;  %v2659_v12 = vadd.f32 %v1816_v6, %v2336_v32  ;;  %v676_v13 = vpop.f32.mrb[25].mxu1 }
 0x22a   :  { %v2010_v8 = vpop.eup %2009  ;;  %1846 = vmatprep.mubr.bf16.mxu0 %v968_v63  ;;  %v853_v16 = vadd.f32 %v821_v2, %v2539_v3  ;;  %v2663_v9 = vadd.f32 %v2336_v32, %v676_v13  ;;  %v1817_v20 = vpop.f32.mrb[26].mxu1  ;;  %v798_v2 = vld [vmem:[%s2901_s9 + $0xd8] sm:$0xff] }
 0x22b   :  { %v2012_v15 = vpop.eup %2011  ;;  %v822_v17 = vmul.f32 %v2010_v8, %v790_v62  ;;  %1847 = vmatmul.mubr.bf16.gmra.mrb[40].mxu0 %v969_v7  ;;  %v851_v14 = vadd.f32 %v819_v11, %v2543_v10  ;;  %v759_v22 = vmul.f32 1.442695, %v2659_v12  ;;  %893 = vst [vmem:[#allocation2 + $0xd0] sm:$0xff] %v2659_v12  ;;  %1550 = vst.msk [vmem:[%s2903_s11 + $0xd0] sm:$0xff] %vm899_vm0, %v2659_v12  ;;  %v679_v18 = vpop.f32.mrb[27].mxu1  ;;  %v946_v35 = vld [vmem:[#allocation2 + $0x70] sm:$0xff] }
 0x22c   :  { %v820_v21 = vmul.f32 %v2012_v15, %v788_v5  ;;  %v2674_v3 = vadd.f32 %v1817_v20, %v2336_v32  ;;  %918 = vst.msk [vmem:[#allocation2 + $0x90] sm:$0xff] %vm899_vm0, %v853_v16  ;;  %v755_v10 = vmul.f32 1.442695, %v2663_v9  ;;  %891 = vst [vmem:[#allocation2 + $0xc0] sm:$0xff] %v2663_v9  ;;  %v2686_v24 = vadd.f32 %v2336_v32, %v679_v18  ;;  %v944_v28 = vld [vmem:[#allocation2 + $0x60] sm:$0xff]  ;;  %v796_v11 = vld [vmem:[%s2901_s9 + $0xc8] sm:$0xff] }
 0x22d   :  { %v854_v23 = vadd.f32 %v822_v17, %v2554_v4  ;;  %1548 = vst.msk [vmem:[%s2903_s11 + $0xc0] sm:$0xff] %vm899_vm0, %v2663_v9  ;;  %916 = vst.msk [vmem:[#allocation2 + $0x80] sm:$0xff] %vm899_vm0, %v851_v14  ;;  %v793_v4 = vld [vmem:[%s2901_s9 + $0xb0] sm:$0xff]  ;;  %2021 = vpow2.f32 %v759_v22 }
 0x22e   :  { %v852_v25 = vadd.f32 %v820_v21, %v2566_v19  ;;  %v761_v36 = vmul.f32 1.442695, %v2674_v3  ;;  %894 = vst [vmem:[#allocation2 + $0xd8] sm:$0xff] %v2674_v3  ;;  %1551 = vst.msk [vmem:[%s2903_s11 + $0xd8] sm:$0xff] %vm899_vm0, %v2674_v3  ;;  %v947_v26 = vld [vmem:[#allocation2 + $0x78] sm:$0xff]  ;;  %v791_v19 = vld [vmem:[%s2901_s9 + $0xa0] sm:$0xff]  ;;  %2023 = vpow2.f32 %v755_v10 }
 0x22f   :  { %919 = vst.msk [vmem:[#allocation2 + $0x98] sm:$0xff] %vm899_vm0, %v854_v23  ;;  %v757_v27 = vmul.f32 1.442695, %v2686_v24  ;;  %892 = vst [vmem:[#allocation2 + $0xc8] sm:$0xff] %v2686_v24  ;;  %v945_v29 = vld [vmem:[#allocation2 + $0x68] sm:$0xff]  ;;  %v2014_v30 = vpop.eup %2013  ;;  %v971_v44 = vpack.c.bf16 %v947_v26, %v946_v35  ;;  %v801_v10 = vld [vmem:[%s2901_s9 + $0xf0] sm:$0xff] }
 0x230   :  { %1549 = vst.msk [vmem:[%s2903_s11 + $0xc8] sm:$0xff] %vm899_vm0, %v2686_v24  ;;  %917 = vst.msk [vmem:[#allocation2 + $0x88] sm:$0xff] %vm899_vm0, %v852_v25  ;;  %2025 = vpow2.f32 %v761_v36  ;;  %v970_v34 = vpack.c.bf16 %v945_v29, %v944_v28  ;;  %v2016_v37 = vpop.eup %2015  ;;  %v825_v39 = vmul.f32 %v2014_v30, %v793_v4  ;;  %v1820_v42 = vpop.f32.mrb[28].mxu1  ;;  %v800_v28 = vld [vmem:[%s2901_s9 + $0xe8] sm:$0xff] }
 0x231   :  { %2027 = vpow2.f32 %v757_v27  ;;  %v823_v48 = vmul.f32 %v2016_v37, %v791_v19  ;;  %v2719_v49 = vadd.f32 %v1820_v42, %v2336_v32  ;;  %v692_v50 = vpop.f32.mrb[29].mxu1 }
 0x232   :  { %v2018_v45 = vpop.eup %2017  ;;  %1850 = vmatprep.mubr.bf16.mxu0 %v970_v34  ;;  %v857_v52 = vadd.f32 %v825_v39, %v2599_v40  ;;  %v2723_v38 = vadd.f32 %v2336_v32, %v692_v50  ;;  %v1821_v55 = vpop.f32.mrb[30].mxu1 }
 0x233   :  { %v2020_v51 = vpop.eup %2019  ;;  %v826_v53 = vmul.f32 %v2018_v45, %v794_v33  ;;  %1851 = vmatmul.mubr.bf16.gmra.mrb[44].mxu0 %v971_v44  ;;  %v855_v43 = vadd.f32 %v823_v48, %v2603_v46  ;;  %v767_v57 = vmul.f32 1.442695, %v2719_v49  ;;  %897 = vst [vmem:[#allocation2 + $0xf0] sm:$0xff] %v2719_v49  ;;  %1554 = vst.msk [vmem:[%s2903_s11 + $0xf0] sm:$0xff] %vm899_vm0, %v2719_v49  ;;  %v695_v47 = vpop.f32.mrb[31].mxu1  ;;  %v950_v6 = vld [vmem:[#allocation2 + $0x90] sm:$0xff] }
 0x234   :  { %v824_v56 = vmul.f32 %v2020_v51, %v792_v41  ;;  %v2734_v40 = vadd.f32 %v1821_v55, %v2336_v32  ;;  %922 = vst.msk [vmem:[#allocation2 + $0xb0] sm:$0xff] %vm899_vm0, %v857_v52  ;;  %v763_v46 = vmul.f32 1.442695, %v2723_v38  ;;  %895 = vst [vmem:[#allocation2 + $0xe0] sm:$0xff] %v2723_v38  ;;  %v2746_v59 = vadd.f32 %v2336_v32, %v695_v47  ;;  %v948_v63 = vld [vmem:[#allocation2 + $0x80] sm:$0xff] }
 0x235   :  { %v858_v58 = vadd.f32 %v826_v53, %v2614_v31  ;;  %1552 = vst.msk [vmem:[%s2903_s11 + $0xe0] sm:$0xff] %vm899_vm0, %v2723_v38  ;;  %920 = vst.msk [vmem:[#allocation2 + $0xa0] sm:$0xff] %vm899_vm0, %v855_v43  ;;  %v797_v31 = vld [vmem:[%s2901_s9 + $0xd0] sm:$0xff]  ;;  %2029 = vpow2.f32 %v767_v57  ;;  %v2809_v47 = vld [vmem:[%s2898_s6] ss:$0 sm:$0xff] }
 0x236   :  { %v856_v60 = vadd.f32 %v824_v56, %v2626_v54  ;;  %v769_v61 = vmul.f32 1.442695, %v2734_v40  ;;  %898 = vst [vmem:[#allocation2 + $0xf8] sm:$0xff] %v2734_v40  ;;  %1555 = vst.msk [vmem:[%s2903_s11 + $0xf8] sm:$0xff] %vm899_vm0, %v2734_v40  ;;  %v951_v32 = vld [vmem:[#allocation2 + $0x98] sm:$0xff]  ;;  %v795_v54 = vld [vmem:[%s2901_s9 + $0xc0] sm:$0xff]  ;;  %2031 = vpow2.f32 %v763_v46 }
 0x237   :  { %923 = vst.msk [vmem:[#allocation2 + $0xb8] sm:$0xff] %vm899_vm0, %v858_v58  ;;  %v765_v62 = vmul.f32 1.442695, %v2746_v59  ;;  %896 = vst [vmem:[#allocation2 + $0xe8] sm:$0xff] %v2746_v59  ;;  %v949_v0 = vld [vmem:[#allocation2 + $0x88] sm:$0xff]  ;;  %v2022_v1 = vpop.eup %2021  ;;  %v973_v13 = vpack.c.bf16 %v951_v32, %v950_v6 }
 0x238   :  { %1553 = vst.msk [vmem:[%s2903_s11 + $0xe8] sm:$0xff] %vm899_vm0, %v2746_v59  ;;  %921 = vst.msk [vmem:[#allocation2 + $0xa8] sm:$0xff] %vm899_vm0, %v856_v60  ;;  %2033 = vpow2.f32 %v769_v61  ;;  %v972_v5 = vpack.c.bf16 %v949_v0, %v948_v63  ;;  %v2024_v7 = vpop.eup %2023  ;;  %v829_v8 = vmul.f32 %v2022_v1, %v797_v31 }
 0x239   :  { %2035 = vpow2.f32 %v765_v62  ;;  %v827_v16 = vmul.f32 %v2024_v7, %v795_v54 }
 0x23a   :  { %v2026_v15 = vpop.eup %2025  ;;  %1854 = vmatprep.mubr.bf16.mxu0 %v972_v5  ;;  %v861_v20 = vadd.f32 %v829_v8, %v2659_v12  ;;  %v799_v12 = vld [vmem:[%s2901_s9 + $0xe0] sm:$0xff] }
 0x23b   :  { %v2028_v17 = vpop.eup %2027  ;;  %v830_v14 = vmul.f32 %v2026_v15, %v798_v2  ;;  %1855 = vmatmul.mubr.bf16.gmra.mrb[48].mxu0 %v973_v13  ;;  %v859_v21 = vadd.f32 %v827_v16, %v2663_v9  ;;  %v954_v26 = vld [vmem:[#allocation2 + $0xb0] sm:$0xff] }
 0x23c   :  { %v828_v22 = vmul.f32 %v2028_v17, %v796_v11  ;;  %926 = vst.msk [vmem:[#allocation2 + $0xd0] sm:$0xff] %vm899_vm0, %v861_v20  ;;  %v952_v9 = vld [vmem:[#allocation2 + $0xa0] sm:$0xff] }
 0x23d   :  { %v862_v18 = vadd.f32 %v830_v14, %v2674_v3  ;;  %924 = vst.msk [vmem:[#allocation2 + $0xc0] sm:$0xff] %vm899_vm0, %v859_v21  ;;  %v802_v3 = vld [vmem:[%s2901_s9 + $0xf8] sm:$0xff] }
 0x23e   :  { %v860_v23 = vadd.f32 %v828_v22, %v2686_v24  ;;  %v955_v25 = vld [vmem:[#allocation2 + $0xb8] sm:$0xff] }
 0x23f   :  { %927 = vst.msk [vmem:[#allocation2 + $0xd8] sm:$0xff] %vm899_vm0, %v862_v18  ;;  %v953_v4 = vld [vmem:[#allocation2 + $0xa8] sm:$0xff]  ;;  %v2030_v36 = vpop.eup %2029  ;;  %v975_v29 = vpack.c.bf16 %v955_v25, %v954_v26 }
 0x240   :  { %925 = vst.msk [vmem:[#allocation2 + $0xc8] sm:$0xff] %vm899_vm0, %v860_v23  ;;  %v974_v24 = vpack.c.bf16 %v953_v4, %v952_v9  ;;  %v2032_v19 = vpop.eup %2031  ;;  %v833_v27 = vmul.f32 %v2030_v36, %v801_v10 }
 0x241   :  { %v831_v33 = vmul.f32 %v2032_v19, %v799_v12 }
 0x242   :  { %v2034_v30 = vpop.eup %2033  ;;  %1858 = vmatprep.mubr.bf16.mxu0 %v974_v24  ;;  %v865_v35 = vadd.f32 %v833_v27, %v2719_v49 }
 0x243   :  { %v2036_v34 = vpop.eup %2035  ;;  %v834_v37 = vmul.f32 %v2034_v30, %v802_v3  ;;  %1859 = vmatmul.mubr.bf16.gmra.mrb[52].mxu0 %v975_v29  ;;  %v863_v39 = vadd.f32 %v831_v33, %v2723_v38  ;;  %v958_v51 = vld [vmem:[#allocation2 + $0xd0] sm:$0xff] }
 0x244   :  { %v832_v41 = vmul.f32 %v2036_v34, %v800_v28  ;;  %930 = vst.msk [vmem:[#allocation2 + $0xf0] sm:$0xff] %vm899_vm0, %v865_v35  ;;  %v956_v48 = vld [vmem:[#allocation2 + $0xc0] sm:$0xff] }
 0x245   :  { %v866_v42 = vadd.f32 %v834_v37, %v2734_v40  ;;  %928 = vst.msk [vmem:[#allocation2 + $0xe0] sm:$0xff] %vm899_vm0, %v863_v39  ;;  %v1972_v40 = vld [vmem:[#allocation6 + $0x38] sm:$0xff]  }
 0x246   :  { %v864_v44 = vadd.f32 %v832_v41, %v2746_v59  ;;  %v959_v45 = vld [vmem:[#allocation2 + $0xd8] sm:$0xff]  ;;  %1884 = vmatprep.subr.bf16.mxu1 %v1972_v40 }
 0x247   :  { %931 = vst.msk [vmem:[#allocation2 + $0xf8] sm:$0xff] %vm899_vm0, %v866_v42  ;;  %v957_v50 = vld [vmem:[#allocation2 + $0xc8] sm:$0xff]  ;;  %v977_v52 = vpack.c.bf16 %v959_v45, %v958_v51  ;;  %1885 = vmatpush3.bf16.msra.mxu1 %v1972_v40 }
 0x248   :  { %929 = vst.msk [vmem:[#allocation2 + $0xe8] sm:$0xff] %vm899_vm0, %v864_v44  ;;  %v976_v49 = vpack.c.bf16 %v957_v50, %v956_v48 }
 0x24a   :  { %1862 = vmatprep.mubr.bf16.mxu0 %v976_v49 }
 0x24b   :  { %1863 = vmatmul.mubr.bf16.gmra.mrb[56].mxu0 %v977_v52  ;;  %v962_v56 = vld [vmem:[#allocation2 + $0xf0] sm:$0xff] }
 0x24c   :  { %v960_v38 = vld [vmem:[#allocation2 + $0xe0] sm:$0xff] }
 0x24e   :  { %v963_v53 = vld [vmem:[#allocation2 + $0xf8] sm:$0xff] }
 0x24f   :  { %v961_v55 = vld [vmem:[#allocation2 + $0xe8] sm:$0xff]  ;;  %v979_v57 = vpack.c.bf16 %v963_v53, %v962_v56 }
 0x250   :  { %v978_v43 = vpack.c.bf16 %v961_v55, %v960_v38 }
 0x252   :  { %1866 = vmatprep.mubr.bf16.mxu0 %v978_v43 }
 0x253   :  { %1867 = vmatmul.mubr.bf16.gmra.mrb[60].mxu0 %v979_v57 }
 0x2ee   :  { %v1840_v58 = vpop.f32.mrb[32].mxu0 }
 0x2ef   :  { %v1094_v46 = vadd.f32 %v1840_v58, %v2809_v47  ;;  %v1085_v59 = vpop.f32.mrb[33].mxu0 }
 0x2f0   :  { %v1086_v60 = vadd.f32 %v2809_v47, %v1085_v59  ;;  %v1841_v31 = vpop.f32.mrb[34].mxu0 }
 0x2f1   :  { %v1097_v61 = vadd.f32 %v1841_v31, %v2809_v47  ;;  %v1088_v32 = vpop.f32.mrb[35].mxu0  ;;  %v1214_v62 = vmax.f32 %v1094_v46, 0.0 }
 0x2f2   :  { %v1089_v54 = vadd.f32 %v2809_v47, %v1088_v32  ;;  %v1212_v0 = vmax.f32 %v1086_v60, 0.0 }
 0x2f3   :  { %v1215_v63 = vmax.f32 %v1097_v61, 0.0 }
 0x2f4   :  { %v1213_v1 = vmax.f32 %v1089_v54, 0.0 }
 0x2f5   :  { %v1245_v2 = vpack.c.bf16 %v1215_v63, %v1214_v62 }
 0x2f6   :  { %v1244_v5 = vpack.c.bf16 %v1213_v1, %v1212_v0  ;;  %v1844_v6 = vpop.f32.mrb[36].mxu0 }
 0x2f7   :  { %v1110_v7 = vadd.f32 %v1844_v6, %v2809_v47  ;;  %v1101_v8 = vpop.f32.mrb[37].mxu0 }
 0x2f8   :  { %v1102_v11 = vadd.f32 %v2809_v47, %v1101_v8  ;;  %v1845_v13 = vpop.f32.mrb[38].mxu0  ;;  %1886 = vmatprep.mubr.bf16.mxu1 %v1244_v5 }
 0x2f9   :  { %v1113_v15 = vadd.f32 %v1845_v13, %v2809_v47  ;;  %v1104_v16 = vpop.f32.mrb[39].mxu0  ;;  %1887 = vmatmul.mubr.bf16.vlgmr.msra.gmra.mrb[32].mxu1 %v1245_v2  ;;  %v1218_v20 = vmax.f32 %v1110_v7, 0.0 }
 0x2fa   :  { %v1105_v17 = vadd.f32 %v2809_v47, %v1104_v16  ;;  %v1216_v21 = vmax.f32 %v1102_v11, 0.0 }
 0x2fb   :  { %v1219_v14 = vmax.f32 %v1113_v15, 0.0 }
 0x2fc   :  { %v1217_v22 = vmax.f32 %v1105_v17, 0.0 }
 0x2fd   :  { %v1247_v18 = vpack.c.bf16 %v1219_v14, %v1218_v20 }
 0x2fe   :  { %v1246_v23 = vpack.c.bf16 %v1217_v22, %v1216_v21  ;;  %v1848_v10 = vpop.f32.mrb[40].mxu0 }
 0x2ff   :  { %v1126_v25 = vadd.f32 %v1848_v10, %v2809_v47  ;;  %v1117_v12 = vpop.f32.mrb[41].mxu0 }
 0x300   :  { %v1118_v9 = vadd.f32 %v2809_v47, %v1117_v12  ;;  %v1849_v4 = vpop.f32.mrb[42].mxu0  ;;  %1890 = vmatprep.mubr.bf16.mxu1 %v1246_v23 }
 0x301   :  { %v1129_v36 = vadd.f32 %v1849_v4, %v2809_v47  ;;  %v1120_v3 = vpop.f32.mrb[43].mxu0  ;;  %1891 = vmatmul.mubr.bf16.gmra.mrb[36].mxu1 %v1247_v18  ;;  %v1222_v26 = vmax.f32 %v1126_v25, 0.0 }
 0x302   :  { %v1121_v24 = vadd.f32 %v2809_v47, %v1120_v3  ;;  %v1220_v27 = vmax.f32 %v1118_v9, 0.0 }
 0x303   :  { %v1223_v19 = vmax.f32 %v1129_v36, 0.0 }
 0x304   :  { %v1221_v28 = vmax.f32 %v1121_v24, 0.0 }
 0x305   :  { %v1249_v29 = vpack.c.bf16 %v1223_v19, %v1222_v26 }
 0x306   :  { %v1248_v30 = vpack.c.bf16 %v1221_v28, %v1220_v27  ;;  %v1852_v33 = vpop.f32.mrb[44].mxu0 }
 0x307   :  { %v1142_v34 = vadd.f32 %v1852_v33, %v2809_v47  ;;  %v1133_v35 = vpop.f32.mrb[45].mxu0 }
 0x308   :  { %v1134_v37 = vadd.f32 %v2809_v47, %v1133_v35  ;;  %v1853_v39 = vpop.f32.mrb[46].mxu0  ;;  %1894 = vmatprep.mubr.bf16.mxu1 %v1248_v30 }
 0x309   :  { %v1145_v41 = vadd.f32 %v1853_v39, %v2809_v47  ;;  %v1136_v42 = vpop.f32.mrb[47].mxu0  ;;  %1895 = vmatmul.mubr.bf16.gmra.mrb[40].mxu1 %v1249_v29  ;;  %v1226_v45 = vmax.f32 %v1142_v34, 0.0 }
 0x30a   :  { %v1137_v44 = vadd.f32 %v2809_v47, %v1136_v42  ;;  %v1224_v50 = vmax.f32 %v1134_v37, 0.0 }
 0x30b   :  { %v1227_v48 = vmax.f32 %v1145_v41, 0.0 }
 0x30c   :  { %v1225_v49 = vmax.f32 %v1137_v44, 0.0  ;;  %v2846_v44 = vld [vmem:[%s2900_s8] ss:$0 sm:$0xff]  ;;  %s2113_s8 = smov [#allocation8]  }
 0x30d   :  { %v1251_v51 = vpack.c.bf16 %v1227_v48, %v1226_v45  ;;  %s1561_s3 = sshll.u32 %s2113_s8, 4  ;;  %s1562_s3 = int_to_ptr.vmem [resolvable:$true] %s1561_s3 }
 0x30e   :  { %v1250_v52 = vpack.c.bf16 %v1225_v49, %v1224_v50  ;;  %v1856_v53 = vpop.f32.mrb[48].mxu0  ;;  %s2081_s23 = scalar_lea.vmem %s1562_s3, 4096  ;;  %p2086_p3 = scmp.lt.s32.totalorder %s1562_s3, %s1562_s3 }
 0x30f   :  { %v1158_v38 = vadd.f32 %v1856_v53, %v2809_v47  ;;  %v1149_v55 = vpop.f32.mrb[49].mxu0  ;;  %p2082_p2 = scmp.ne.s32.totalorder %s1562_s3, %s2081_s23  ;;  %p2087_p4 = scmp.lt.s32.totalorder %s2081_s23, %s2081_s23 }
 0x310   :  { %v1150_v43 = vadd.f32 %v2809_v47, %v1149_v55  ;;  %v1857_v56 = vpop.f32.mrb[50].mxu0  ;;  %1898 = vmatprep.mubr.bf16.mxu1 %v1250_v52 }
 0x311   :  { %v1161_v57 = vadd.f32 %v1857_v56, %v2809_v47  ;;  %v1152_v40 = vpop.f32.mrb[51].mxu0  ;;  %1899 = vmatmul.mubr.bf16.gmra.mrb[44].mxu1 %v1251_v51  ;;  %v1230_v46 = vmax.f32 %v1158_v38, 0.0  ;;  %p2088_p5 = por %p2087_p4, %p2086_p3 }
 0x312   :  { %v1153_v58 = vadd.f32 %v2809_v47, %v1152_v40  ;;  %v1228_v60 = vmax.f32 %v1150_v43, 0.0 }
 0x313   :  { %v1231_v59 = vmax.f32 %v1161_v57, 0.0  ;;  %p2089_p6 = pnand %p2088_p5, %p2082_p2 }
 0x314   :  { %v1229_v31 = vmax.f32 %v1153_v58, 0.0 }
 0x315   :  { %v1253_v61 = vpack.c.bf16 %v1231_v59, %v1230_v46 }
 0x316   :  { %v1252_v32 = vpack.c.bf16 %v1229_v31, %v1228_v60  ;;  %v1860_v54 = vpop.f32.mrb[52].mxu0 }
 0x317   :  { %v1174_v62 = vadd.f32 %v1860_v54, %v2809_v47  ;;  %v1165_v63 = vpop.f32.mrb[53].mxu0 }
 0x318   :  { %v1166_v0 = vadd.f32 %v2809_v47, %v1165_v63  ;;  %v1861_v1 = vpop.f32.mrb[54].mxu0  ;;  %1902 = vmatprep.mubr.bf16.mxu1 %v1252_v32 }
 0x319   :  { %v1177_v2 = vadd.f32 %v1861_v1, %v2809_v47  ;;  %v1168_v5 = vpop.f32.mrb[55].mxu0  ;;  %1903 = vmatmul.mubr.bf16.gmra.mrb[48].mxu1 %v1253_v61  ;;  %v1234_v7 = vmax.f32 %v1174_v62, 0.0 }
 0x31a   :  { %v1169_v6 = vadd.f32 %v2809_v47, %v1168_v5  ;;  %v1232_v11 = vmax.f32 %v1166_v0, 0.0 }
 0x31b   :  { %v1235_v8 = vmax.f32 %v1177_v2, 0.0 }
 0x31c   :  { %v1233_v13 = vmax.f32 %v1169_v6, 0.0 }
 0x31d   :  { %v1255_v15 = vpack.c.bf16 %v1235_v8, %v1234_v7 }
 0x31e   :  { %v1254_v16 = vpack.c.bf16 %v1233_v13, %v1232_v11  ;;  %v1864_v17 = vpop.f32.mrb[56].mxu0 }
 0x31f   :  { %v1190_v20 = vadd.f32 %v1864_v17, %v2809_v47  ;;  %v1181_v14 = vpop.f32.mrb[57].mxu0 }
 0x320   :  { %v1182_v21 = vadd.f32 %v2809_v47, %v1181_v14  ;;  %v1865_v22 = vpop.f32.mrb[58].mxu0  ;;  %1906 = vmatprep.mubr.bf16.mxu1 %v1254_v16 }
 0x321   :  { %v1193_v18 = vadd.f32 %v1865_v22, %v2809_v47  ;;  %v1184_v23 = vpop.f32.mrb[59].mxu0  ;;  %1907 = vmatmul.mubr.bf16.gmra.mrb[52].mxu1 %v1255_v15  ;;  %v1238_v25 = vmax.f32 %v1190_v20, 0.0 }
 0x322   :  { %v1185_v10 = vadd.f32 %v2809_v47, %v1184_v23  ;;  %v1236_v9 = vmax.f32 %v1182_v21, 0.0 }
 0x323   :  { %v1239_v12 = vmax.f32 %v1193_v18, 0.0 }
 0x324   :  { %v1237_v4 = vmax.f32 %v1185_v10, 0.0 }
 0x325   :  { %v1257_v36 = vpack.c.bf16 %v1239_v12, %v1238_v25 }
 0x326   :  { %v1256_v3 = vpack.c.bf16 %v1237_v4, %v1236_v9  ;;  %v1868_v24 = vpop.f32.mrb[60].mxu0 }
 0x327   :  { %v1206_v26 = vadd.f32 %v1868_v24, %v2809_v47  ;;  %v1197_v19 = vpop.f32.mrb[61].mxu0 }
 0x328   :  { %v1198_v27 = vadd.f32 %v2809_v47, %v1197_v19  ;;  %v1869_v28 = vpop.f32.mrb[62].mxu0  ;;  %1910 = vmatprep.mubr.bf16.mxu1 %v1256_v3 }
 0x329   :  { %v1209_v29 = vadd.f32 %v1869_v28, %v2809_v47  ;;  %v1200_v30 = vpop.f32.mrb[63].mxu0  ;;  %1911 = vmatmul.mubr.bf16.gmra.mrb[56].mxu1 %v1257_v36  ;;  %v1242_v34 = vmax.f32 %v1206_v26, 0.0 }
 0x32a   :  { %v1201_v33 = vadd.f32 %v2809_v47, %v1200_v30  ;;  %v1240_v37 = vmax.f32 %v1198_v27, 0.0 }
 0x32b   :  { %v1243_v35 = vmax.f32 %v1209_v29, 0.0 }
 0x32c   :  { %v1241_v39 = vmax.f32 %v1201_v33, 0.0 }
 0x32d   :  { %v1259_v41 = vpack.c.bf16 %v1243_v35, %v1242_v34 }
 0x32e   :  { %v1258_v42 = vpack.c.bf16 %v1241_v39, %v1240_v37 }
 0x330   :  { %1914 = vmatprep.mubr.bf16.mxu1 %v1258_v42 }
 0x331   :  { %1915 = vmatmul.mubr.bf16.gmra.mrb[60].mxu1 %v1259_v41 }
 0x3cc   :  { %v1888_v45 = vpop.f32.mrb[32].mxu1 }
 0x3cd   :  { %v1374_v48 = vadd.f32 %v1888_v45, %v2846_v44  ;;  %v1365_v50 = vpop.f32.mrb[33].mxu1 }
 0x3ce   :  { %v1366_v49 = vadd.f32 %v2846_v44, %v1365_v50  ;;  %v1889_v47 = vpop.f32.mrb[34].mxu1 }
 0x3cf   :  { %1494 = vst [vmem:[#allocation8 + $0x10] sm:$0xff] %v1374_v48  ;;  %v1377_v51 = vadd.f32 %v1889_v47, %v2846_v44  ;;  %v1368_v52 = vpop.f32.mrb[35].mxu1 }
 0x3d0   :  { %1492 = vst [vmem:[#allocation8] sm:$0xff] %v1366_v49  ;;  %v1369_v53 = vadd.f32 %v2846_v44, %v1368_v52 }
 0x3d1   :  { %1495 = vst [vmem:[#allocation8 + $0x18] sm:$0xff] %v1377_v51 }
 0x3d2   :  { %1493 = vst [vmem:[#allocation8 + $0x8] sm:$0xff] %v1369_v53 }
 0x3d4   :  { %v1892_v38 = vpop.f32.mrb[36].mxu1 }
 0x3d5   :  { %v1390_v55 = vadd.f32 %v1892_v38, %v2846_v44  ;;  %v1381_v43 = vpop.f32.mrb[37].mxu1 }
 0x3d6   :  { %v1382_v56 = vadd.f32 %v2846_v44, %v1381_v43  ;;  %v1893_v57 = vpop.f32.mrb[38].mxu1 }
 0x3d7   :  { %1498 = vst [vmem:[#allocation8 + $0x30] sm:$0xff] %v1390_v55  ;;  %v1393_v40 = vadd.f32 %v1893_v57, %v2846_v44  ;;  %v1384_v58 = vpop.f32.mrb[39].mxu1 }
 0x3d8   :  { %1496 = vst [vmem:[#allocation8 + $0x20] sm:$0xff] %v1382_v56  ;;  %v1385_v46 = vadd.f32 %v2846_v44, %v1384_v58 }
 0x3d9   :  { %1499 = vst [vmem:[#allocation8 + $0x38] sm:$0xff] %v1393_v40 }
 0x3da   :  { %1497 = vst [vmem:[#allocation8 + $0x28] sm:$0xff] %v1385_v46 }
 0x3dc   :  { %v1896_v59 = vpop.f32.mrb[40].mxu1 }
 0x3dd   :  { %v1406_v60 = vadd.f32 %v1896_v59, %v2846_v44  ;;  %v1397_v31 = vpop.f32.mrb[41].mxu1 }
 0x3de   :  { %v1398_v61 = vadd.f32 %v2846_v44, %v1397_v31  ;;  %v1897_v32 = vpop.f32.mrb[42].mxu1 }
 0x3df   :  { %1502 = vst [vmem:[#allocation8 + $0x50] sm:$0xff] %v1406_v60  ;;  %v1409_v54 = vadd.f32 %v1897_v32, %v2846_v44  ;;  %v1400_v62 = vpop.f32.mrb[43].mxu1 }
 0x3e0   :  { %1500 = vst [vmem:[#allocation8 + $0x40] sm:$0xff] %v1398_v61  ;;  %v1401_v63 = vadd.f32 %v2846_v44, %v1400_v62 }
 0x3e1   :  { %1503 = vst [vmem:[#allocation8 + $0x58] sm:$0xff] %v1409_v54 }
 0x3e2   :  { %1501 = vst [vmem:[#allocation8 + $0x48] sm:$0xff] %v1401_v63 }
 0x3e4   :  { %v1900_v0 = vpop.f32.mrb[44].mxu1 }
 0x3e5   :  { %v1422_v1 = vadd.f32 %v1900_v0, %v2846_v44  ;;  %v1413_v2 = vpop.f32.mrb[45].mxu1 }
 0x3e6   :  { %v1414_v5 = vadd.f32 %v2846_v44, %v1413_v2  ;;  %v1901_v6 = vpop.f32.mrb[46].mxu1 }
 0x3e7   :  { %1506 = vst [vmem:[#allocation8 + $0x70] sm:$0xff] %v1422_v1  ;;  %v1425_v7 = vadd.f32 %v1901_v6, %v2846_v44  ;;  %v1416_v8 = vpop.f32.mrb[47].mxu1 }
 0x3e8   :  { %1504 = vst [vmem:[#allocation8 + $0x60] sm:$0xff] %v1414_v5  ;;  %v1417_v11 = vadd.f32 %v2846_v44, %v1416_v8 }
 0x3e9   :  { %1507 = vst [vmem:[#allocation8 + $0x78] sm:$0xff] %v1425_v7 }
 0x3ea   :  { %1505 = vst [vmem:[#allocation8 + $0x68] sm:$0xff] %v1417_v11 }
 0x3ec   :  { %v1904_v13 = vpop.f32.mrb[48].mxu1 }
 0x3ed   :  { %v1438_v15 = vadd.f32 %v1904_v13, %v2846_v44  ;;  %v1429_v16 = vpop.f32.mrb[49].mxu1 }
 0x3ee   :  { %v1430_v17 = vadd.f32 %v2846_v44, %v1429_v16  ;;  %v1905_v20 = vpop.f32.mrb[50].mxu1 }
 0x3ef   :  { %1510 = vst [vmem:[#allocation8 + $0x90] sm:$0xff] %v1438_v15  ;;  %v1441_v14 = vadd.f32 %v1905_v20, %v2846_v44  ;;  %v1432_v21 = vpop.f32.mrb[51].mxu1 }
 0x3f0   :  { %1508 = vst [vmem:[#allocation8 + $0x80] sm:$0xff] %v1430_v17  ;;  %v1433_v22 = vadd.f32 %v2846_v44, %v1432_v21 }
 0x3f1   :  { %1511 = vst [vmem:[#allocation8 + $0x98] sm:$0xff] %v1441_v14 }
 0x3f2   :  { %1509 = vst [vmem:[#allocation8 + $0x88] sm:$0xff] %v1433_v22 }
 0x3f4   :  { %v1908_v18 = vpop.f32.mrb[52].mxu1 }
 0x3f5   :  { %v1454_v23 = vadd.f32 %v1908_v18, %v2846_v44  ;;  %v1445_v10 = vpop.f32.mrb[53].mxu1 }
 0x3f6   :  { %v1446_v25 = vadd.f32 %v2846_v44, %v1445_v10  ;;  %v1909_v12 = vpop.f32.mrb[54].mxu1 }
 0x3f7   :  { %1514 = vst [vmem:[#allocation8 + $0xb0] sm:$0xff] %v1454_v23  ;;  %v1457_v9 = vadd.f32 %v1909_v12, %v2846_v44  ;;  %v1448_v4 = vpop.f32.mrb[55].mxu1 }
 0x3f8   :  { %1512 = vst [vmem:[#allocation8 + $0xa0] sm:$0xff] %v1446_v25  ;;  %v1449_v36 = vadd.f32 %v2846_v44, %v1448_v4 }
 0x3f9   :  { %1515 = vst [vmem:[#allocation8 + $0xb8] sm:$0xff] %v1457_v9 }
 0x3fa   :  { %1513 = vst [vmem:[#allocation8 + $0xa8] sm:$0xff] %v1449_v36 }
 0x3fc   :  { %v1912_v3 = vpop.f32.mrb[56].mxu1 }
 0x3fd   :  { %v1470_v24 = vadd.f32 %v1912_v3, %v2846_v44  ;;  %v1461_v26 = vpop.f32.mrb[57].mxu1 }
 0x3fe   :  { %v1462_v19 = vadd.f32 %v2846_v44, %v1461_v26  ;;  %v1913_v27 = vpop.f32.mrb[58].mxu1 }
 0x3ff   :  { %1518 = vst [vmem:[#allocation8 + $0xd0] sm:$0xff] %v1470_v24  ;;  %v1473_v28 = vadd.f32 %v1913_v27, %v2846_v44  ;;  %v1464_v29 = vpop.f32.mrb[59].mxu1 }
 0x400   :  { %1516 = vst [vmem:[#allocation8 + $0xc0] sm:$0xff] %v1462_v19  ;;  %v1465_v30 = vadd.f32 %v2846_v44, %v1464_v29 }
 0x401   :  { %1519 = vst [vmem:[#allocation8 + $0xd8] sm:$0xff] %v1473_v28 }
 0x402   :  { %1517 = vst [vmem:[#allocation8 + $0xc8] sm:$0xff] %v1465_v30 }
 0x404   :  { %v1916_v33 = vpop.f32.mrb[60].mxu1 }
 0x405   :  { %v1486_v34 = vadd.f32 %v1916_v33, %v2846_v44  ;;  %v1477_v35 = vpop.f32.mrb[61].mxu1 }
 0x406   :  { %v1478_v37 = vadd.f32 %v2846_v44, %v1477_v35  ;;  %v1917_v39 = vpop.f32.mrb[62].mxu1 }
 0x407   :  { %1522 = vst [vmem:[#allocation8 + $0xf0] sm:$0xff] %v1486_v34  ;;  %v1489_v41 = vadd.f32 %v1917_v39, %v2846_v44  ;;  %v1480_v42 = vpop.f32.mrb[63].mxu1 }
 0x408   :  { %1520 = vst [vmem:[#allocation8 + $0xe0] sm:$0xff] %v1478_v37  ;;  %v1481_v45 = vadd.f32 %v2846_v44, %v1480_v42 }
 0x409   :  { %1523 = vst [vmem:[#allocation8 + $0xf8] sm:$0xff] %v1489_v41 }
 0x40a   :  { %1521 = vst [vmem:[#allocation8 + $0xe8] sm:$0xff] %v1481_v45 }
 0x40b   :  { %2092 = shalt.err (!%p2089_p6)
}
 0x40c   :  { %s2093_s25 = scalar_lea.hbm %s2902_s10, 4096 }
 0x40d   :  { %p2094_p7 = scmp.ne.s32.totalorder %s2902_s10, %s2093_s25  ;;  %p2097_p8 = scmp.lt.u32.totalorder %s2093_s25, %s2902_s10 }
 0x40f   :  { %p2099_p9 = pnand %p2097_p8, %p2094_p7 }
 0x411   :  { %2102 = shalt.err (!%p2099_p9)
}
 0x412   :  { %s2114_s7 = smov 128   ;;  %s2115_s27 = smov 8  }
 0x413   :  { %1567 = dma.vmem_to_hbm [thread:$0]  %s1562_s3, 4096, %s2902_s10, [#allocation5], %s2114_s7, %s2114_s7, %s2115_s27  }
 0x414   :  { %2107 = dma.done.wait [#allocation5], 4096  }
 0x415   :  { %2108 = vsyncadd [#allocation5], 4294963200 }
 0x416   :  { %1575 = vsyncpa [#allocation4], 1 }
 0x417   :  { %1576 = vsyncpa [#allocation7], 1 }
 0x418   :  { %1577 = vsyncpa [#allocation5], 1 }

</bundles_post_ra>
